<compile_context>
chip_gen: v7x
topology: tpu7x:2x2x1
jax: 0.10.0
libtpu: 0.0.40
codegen_flags: <defaults>
</compile_context>

<pallas_src>
import math

import jax
import jax.numpy as jnp
from jax.experimental import pallas as pl
from jax.experimental.pallas import tpu as pltpu


# ---------------------------------------------------------------------------
# Fused kernel: stacked GRU layers + last-timestep linear head.
# ---------------------------------------------------------------------------
def _make_fused_gru_kernel(n_layers, T, Bp, H):
    three_h = 3 * H
    unroll = min(T, 8)

    def kernel(*refs):
        # inputs: x, n_layers * [w_i (D,3H), w_h (H,3H), bias_i (1,3H), b_hn (1,H)],
        #         out_w_t (H,C), out_b (1,C) ; then out_ref ; then gi/seq scratch.
        x_ref = refs[0]
        layer_refs = [refs[1 + 4 * l: 1 + 4 * (l + 1)] for l in range(n_layers)]
        out_w_ref = refs[1 + 4 * n_layers]
        out_b_ref = refs[2 + 4 * n_layers]
        out_ref = refs[3 + 4 * n_layers]
        gi_ref, seq_ref = refs[4 + 4 * n_layers:]

        h_last = None
        for layer in range(n_layers):
            w_i_ref, w_h_ref, bias_i_ref, b_hn_ref = layer_refs[layer]

            # --- hoisted input projection: ONE (T*Bp, D) x (D, 3H) GEMM ---------
            # Layer 0 input arrives pre-flattened, time-major, bf16 from the
            # wrapper; later layers read the previous layer's sequence from VMEM.
            if layer == 0:
                xin = x_ref[...]                               # (T*Bp, E) bf16
            else:
                xin = seq_ref[...].astype(jnp.bfloat16)        # (T*Bp, H)
            gi_ref[...] = (jnp.dot(xin, w_i_ref[...],
                                   preferred_element_type=jnp.float32)
                           + bias_i_ref[...])                  # folded b_r/b_z/b_in

            # Time-invariant recurrent weight slab + hoisted b_hn broadcast.
            w_h = w_h_ref[...]                                 # (H, 3H) bf16
            b_hn_b = jnp.broadcast_to(b_hn_ref[...], (Bp, H))  # hoisted out of loop
            write_seq = (layer + 1 < n_layers)                 # last layer: h_T only

            def step(t, h):
                # 8-row-aligned slice (Bp is a multiple of the f32 sublane group).
                rows = pl.ds(pl.multiple_of(t * Bp, Bp), Bp)
                # ONE fused recurrent matmul per step: (Bp,H) x (H,3H).
                gh = jnp.dot(h.astype(jnp.bfloat16), w_h,
                             preferred_element_type=jnp.float32)   # (Bp, 3H) f32
                gi = gi_ref[rows, :]                                # (Bp, 3H) f32
                rz = jax.nn.sigmoid(gi[:, :2 * H] + gh[:, :2 * H])
                r = rz[:, :H]
                z = rz[:, H:2 * H]
                n = jnp.tanh(gi[:, 2 * H:] + r * (gh[:, 2 * H:] + b_hn_b))
                h_new = n + z * (h - n)            # == (1-z)*n + z*h
                if write_seq:
                    seq_ref[rows, :] = h_new       # feeds next layer (VMEM only)
                return h_new

            h_last = jax.lax.fori_loop(0, T, step,
                                       jnp.zeros((Bp, H), jnp.float32),  # h_0 = 0
                                       unroll=unroll)

        # Final linear head on the last timestep's hidden state.
        logits = jnp.dot(h_last.astype(jnp.bfloat16), out_w_ref[...],
                         preferred_element_type=jnp.float32) + out_b_ref[...]
        out_ref[...] = logits.astype(out_ref.dtype)

    return kernel


def gru_model_forward(tokens, kparams):
    """tokens: (B, T) int32.  Mirrors GRU.forward of the PyTorch module."""
    B, T = tokens.shape
    # Time-major reorder on the tokens BEFORE the gather (no (B,T,E) transpose).
    x = jnp.take(kparams["embed"], tokens.T, axis=0)          # (T, B, E) f32
    E = x.shape[-1]
    Bp = ((B + 7) // 8) * 8                                   # pad batch to sublane group
    x = jnp.pad(x, ((0, 0), (0, Bp - B), (0, 0)))             # zero rows are inert
    x = x.reshape(T * Bp, E).astype(jnp.bfloat16)             # bf16 MXU input

    layers = kparams["gru"]
    n_layers = len(layers)
    H = layers[0][1].shape[0]                                 # w_h: (H, 3H)
    C = kparams["out_w_t"].shape[1]
    flat = [w for layer in layers for w in layer]

    kernel = _make_fused_gru_kernel(n_layers, T, Bp, H)
    n_in = 1 + 4 * n_layers + 2
    vspec = pl.BlockSpec(memory_space=pltpu.MemorySpace.VMEM)  # whole array in VMEM

    # Scoped-VMEM budget from what is actually resident (weights, activations,
    # scratch) plus headroom for compiler temporaries.
    scratch_bytes = T * Bp * (3 * H + H) * 4
    resident = (x.size * x.dtype.itemsize
                + sum(int(a.size) * a.dtype.itemsize for a in flat)
                + int(kparams["out_w_t"].size) * 2 + int(kparams["out_b"].size) * 4
                + Bp * C * 4 + scratch_bytes)
    vmem_limit = int(min(64 << 20, max(4 << 20, 2 * resident)))

    out_pad = pl.pallas_call(
        kernel,
        out_shape=jax.ShapeDtypeStruct((Bp, C), jnp.float32),
        in_specs=[vspec] * n_in,
        out_specs=vspec,
        scratch_shapes=[pltpu.VMEM((T * Bp, 3 * H), jnp.float32),   # fused gi
                        pltpu.VMEM((T * Bp, H), jnp.float32)],      # inter-layer seq
        compiler_params=pltpu.CompilerParams(vmem_limit_bytes=vmem_limit),
    )(x, *flat, kparams["out_w_t"], kparams["out_b"])
    return out_pad[:B]                                         # drop padded rows


# ---------------------------------------------------------------------------
# Parameters: PyTorch-layout init + conversion to the fused kernel layout.
# ---------------------------------------------------------------------------
def init_params(key, n_layers, hidden_dim, n_vocab, embed_dim, n_classes):
    """PyTorch-layout synthetic params: uniform(-1/sqrt(H), 1/sqrt(H))."""
    s = 1.0 / math.sqrt(hidden_dim)
    keys = iter(jax.random.split(key, 3 + 4 * n_layers))

    def u(k, shape):
        return jax.random.uniform(k, shape, jnp.float32, -s, s)

    params = {
        "embed": jax.random.normal(next(keys), (n_vocab, embed_dim), jnp.float32),
        "gru": [],
        "out_w": u(next(keys), (n_classes, hidden_dim)),   # nn.Linear.weight (C, H)
        "out_b": u(next(keys), (n_classes,)),
    }
    d = embed_dim
    for _ in range(n_layers):
        params["gru"].append({
            "w_ih": u(next(keys), (3 * hidden_dim, d)),          # rows r|z|n
            "w_hh": u(next(keys), (3 * hidden_dim, hidden_dim)),
            "b_ih": u(next(keys), (3 * hidden_dim,)),
            "b_hh": u(next(keys), (3 * hidden_dim,)),
        })
        d = hidden_dim
    return params


def prepare_kernel_params(params, H):
    """PyTorch layout -> fused transposed bf16 slabs + folded f32 biases."""
    kp = {
        "embed": params["embed"],
        "gru": [],
        "out_w_t": params["out_w"].T.astype(jnp.bfloat16),        # (H, C)
        "out_b": params["out_b"].reshape(1, -1).astype(jnp.float32),
    }
    for layer in params["gru"]:
        w_ih, w_hh = layer["w_ih"], layer["w_hh"]                 # (3H, D), (3H, H)
        b_ih, b_hh = layer["b_ih"], layer["b_hh"]
        w_i = w_ih.T.astype(jnp.bfloat16)                         # (D, 3H), cols r|z|n
        w_h = w_hh.T.astype(jnp.bfloat16)                         # (H, 3H), cols r|z|n
        # Fold b_hr/b_hz into the hoisted input projection; keep b_hn separate
        # (it sits inside the r-gated term, matching PyTorch).
        bias_i = jnp.concatenate([b_ih[0:H] + b_hh[0:H],
                                  b_ih[H:2 * H] + b_hh[H:2 * H],
                                  b_ih[2 * H:3 * H]]).reshape(1, 3 * H)
        b_hn = b_hh[2 * H:3 * H].reshape(1, H)
        kp["gru"].append([w_i, w_h,
                          bias_i.astype(jnp.float32), b_hn.astype(jnp.float32)])
    return kp


# ---------------------------------------------------------------------------
# Pure-JAX reference built from the ORIGINAL f32 PyTorch-layout params, so the
# tolerance bounds the bf16 weight-quantization error of the kernel.
# ---------------------------------------------------------------------------
def gru_reference(tokens, params):
    x = jnp.take(params["embed"], tokens, axis=0)                # (B, T, E)
    B, T, _ = x.shape
    seq = jnp.transpose(x, (1, 0, 2))                            # (T, B, E)
    h = None
    for layer in params["gru"]:
        w_ih, w_hh = layer["w_ih"], layer["w_hh"]
        b_ih, b_hh = layer["b_ih"], layer["b_hh"]
        H = w_hh.shape[1]
        w_ir, w_iz, w_in = w_ih[:H], w_ih[H:2 * H], w_ih[2 * H:]
        w_hr, w_hz, w_hn = w_hh[:H], w_hh[H:2 * H], w_hh[2 * H:]
        b_ir, b_iz, b_in = b_ih[:H], b_ih[H:2 * H], b_ih[2 * H:]
        b_hr, b_hz, b_hn = b_hh[:H], b_hh[H:2 * H], b_hh[2 * H:]
        h = jnp.zeros((B, H), jnp.float32)
        outs = []
        for t in range(T):
            xt = seq[t]
            r = jax.nn.sigmoid(xt @ w_ir.T + b_ir + h @ w_hr.T + b_hr)
            z = jax.nn.sigmoid(xt @ w_iz.T + b_iz + h @ w_hz.T + b_hz)
            n = jnp.tanh(xt @ w_in.T + b_in + r * (h @ w_hn.T + b_hn))
            h = (1.0 - z) * n + z * h
            outs.append(h)
        seq = jnp.stack(outs, axis=0)
    return h @ params["out_w"].T + params["out_b"]


if __name__ == "__main__":
    n_layers, hidden_dim = 2, 32
    n_vocab, embed_dim, n_classes = 50, 16, 2
    batch, seq_len = 4, 8

    key = jax.random.PRNGKey(0)
    k_param, k_tok = jax.random.split(key)
    params = init_params(k_param, n_layers, hidden_dim, n_vocab, embed_dim, n_classes)
    kparams = prepare_kernel_params(params, hidden_dim)
    tokens = jax.random.randint(k_tok, (batch, seq_len), 0, n_vocab, dtype=jnp.int32)

    fwd = jax.jit(gru_model_forward)
    logits = fwd(tokens, kparams)
    jax.block_until_ready(logits)

    assert logits.shape == (batch, n_classes)
    ref = gru_reference(tokens, params)       # original f32 params (bounds bf16 error)
    assert jnp.allclose(logits, ref, atol=5e-2, rtol=5e-2), (logits, ref)
    print("KERNEL_OK")
</pallas_src>

<mosaic_0001>
module attributes {stable_mosaic.version = 11 : i64} {
  func.func @kernel(%arg0: memref<64x16xbf16, #tpu.memory_space<vmem>>, %arg1: memref<16x96xbf16, #tpu.memory_space<vmem>>, %arg2: memref<32x96xbf16, #tpu.memory_space<vmem>>, %arg3: memref<1x96xf32, #tpu.memory_space<vmem>>, %arg4: memref<1x32xf32, #tpu.memory_space<vmem>>, %arg5: memref<32x96xbf16, #tpu.memory_space<vmem>>, %arg6: memref<32x96xbf16, #tpu.memory_space<vmem>>, %arg7: memref<1x96xf32, #tpu.memory_space<vmem>>, %arg8: memref<1x32xf32, #tpu.memory_space<vmem>>, %arg9: memref<32x2xbf16, #tpu.memory_space<vmem>>, %arg10: memref<1x2xf32, #tpu.memory_space<vmem>>, %arg11: memref<8x2xf32, #tpu.memory_space<vmem>>, %arg12: memref<64x96xf32, #tpu.memory_space<vmem>>, %arg13: memref<64x32xf32, #tpu.memory_space<vmem>>) attributes {dimension_semantics = [], scalar_prefetch = 0 : i64, scratch_operands = 2 : i64, tpu.core_type = #tpu.core_type<tc>} {
    %c0 = arith.constant 0 : index
    %c0_0 = arith.constant 0 : index
    %0 = vector.load %arg0[%c0, %c0_0] : memref<64x16xbf16, #tpu.memory_space<vmem>>, vector<64x16xbf16>
    %c0_1 = arith.constant 0 : index
    %c0_2 = arith.constant 0 : index
    %1 = vector.load %arg1[%c0_1, %c0_2] : memref<16x96xbf16, #tpu.memory_space<vmem>>, vector<16x96xbf16>
    %cst = arith.constant dense<0.000000e+00> : vector<64x96xf32>
    %2 = tpu.matmul %0, %1, %cst {dimension_numbers = #tpu.dot_dimension_numbers<[1], [0], [0], [1], [0, 0, 1, 1], [], []>} : vector<64x16xbf16>, vector<16x96xbf16>, vector<64x96xf32> -> vector<64x96xf32>
    %c0_3 = arith.constant 0 : index
    %c0_4 = arith.constant 0 : index
    %3 = vector.load %arg3[%c0_3, %c0_4] : memref<1x96xf32, #tpu.memory_space<vmem>>, vector<1x96xf32>
    %4 = vector.broadcast %3 : vector<1x96xf32> to vector<64x96xf32>
    %5 = arith.addf %2, %4 : vector<64x96xf32>
    %c0_5 = arith.constant 0 : index
    %c0_6 = arith.constant 0 : index
    %6 = vector.load %arg12[%c0_5, %c0_6] : memref<64x96xf32, #tpu.memory_space<vmem>>, vector<64x96xf32>
    tpu.vector_store %arg12[%c0_5, %c0_6], %5 {strides = array<i32>} : memref<64x96xf32, #tpu.memory_space<vmem>>, vector<64x96xf32>,
    %c0_7 = arith.constant 0 : index
    %c0_8 = arith.constant 0 : index
    %7 = vector.load %arg2[%c0_7, %c0_8] : memref<32x96xbf16, #tpu.memory_space<vmem>>, vector<32x96xbf16>
    %c0_9 = arith.constant 0 : index
    %c0_10 = arith.constant 0 : index
    %8 = vector.load %arg4[%c0_9, %c0_10] : memref<1x32xf32, #tpu.memory_space<vmem>>, vector<1x32xf32>
    %9 = vector.shape_cast %8 : vector<1x32xf32> to vector<1x32xf32>
    %10 = vector.broadcast %9 : vector<1x32xf32> to vector<8x32xf32>
    %cst_11 = arith.constant 0.000000e+00 : f32
    %11 = vector.broadcast %cst_11 : f32 to vector<8x32xf32>
    %c0_i32 = arith.constant 0 : i32
    %c8_i32 = arith.constant 8 : i32
    %12 = arith.muli %c0_i32, %c8_i32 : i32
    %13 = tpu.assume_multiple %12, 8 : i32
    %14 = arith.truncf %11 : vector<8x32xf32> to vector<8x32xbf16>
    %cst_12 = arith.constant dense<0.000000e+00> : vector<8x96xf32>
    %15 = tpu.matmul %14, %7, %cst_12 {dimension_numbers = #tpu.dot_dimension_numbers<[1], [0], [0], [1], [0, 0, 1, 1], [], []>} : vector<8x32xbf16>, vector<32x96xbf16>, vector<8x96xf32> -> vector<8x96xf32>
    %16 = arith.index_cast %13 : i32 to index
    %c0_13 = arith.constant 0 : index
    %17 = vector.load %arg12[%16, %c0_13] : memref<64x96xf32, #tpu.memory_space<vmem>>, vector<8x96xf32>
    %18 = vector.extract_strided_slice %17 {offsets = [0, 0], sizes = [8, 64], strides = [1, 1]} : vector<8x96xf32> to vector<8x64xf32>
    %19 = vector.extract_strided_slice %15 {offsets = [0, 0], sizes = [8, 64], strides = [1, 1]} : vector<8x96xf32> to vector<8x64xf32>
    %20 = arith.addf %18, %19 : vector<8x64xf32>
    %21 = arith.negf %20 : vector<8x64xf32>
    %22 = math.exp %21 : vector<8x64xf32>
    %cst_14 = arith.constant 1.000000e+00 : f32
    %23 = vector.broadcast %cst_14 : f32 to vector<8x64xf32>
    %24 = arith.addf %23, %22 : vector<8x64xf32>
    %25 = arith.divf %23, %24 : vector<8x64xf32>
    %26 = vector.extract_strided_slice %25 {offsets = [0, 0], sizes = [8, 32], strides = [1, 1]} : vector<8x64xf32> to vector<8x32xf32>
    %27 = vector.extract_strided_slice %25 {offsets = [0, 32], sizes = [8, 32], strides = [1, 1]} : vector<8x64xf32> to vector<8x32xf32>
    %28 = vector.extract_strided_slice %17 {offsets = [0, 64], sizes = [8, 32], strides = [1, 1]} : vector<8x96xf32> to vector<8x32xf32>
    %29 = vector.extract_strided_slice %15 {offsets = [0, 64], sizes = [8, 32], strides = [1, 1]} : vector<8x96xf32> to vector<8x32xf32>
    %30 = arith.addf %29, %10 : vector<8x32xf32>
    %31 = arith.mulf %26, %30 : vector<8x32xf32>
    %32 = arith.addf %28, %31 : vector<8x32xf32>
    %33 = math.tanh %32 : vector<8x32xf32>
    %34 = arith.subf %11, %33 : vector<8x32xf32>
    %35 = arith.mulf %27, %34 : vector<8x32xf32>
    %36 = arith.addf %33, %35 : vector<8x32xf32>
    %37 = arith.index_cast %13 : i32 to index
    %c0_15 = arith.constant 0 : index
    %38 = vector.load %arg13[%37, %c0_15] : memref<64x32xf32, #tpu.memory_space<vmem>>, vector<8x32xf32>
    tpu.vector_store %arg13[%37, %c0_15], %36 {strides = array<i32>} : memref<64x32xf32, #tpu.memory_space<vmem>>, vector<8x32xf32>,
    %c1_i32 = arith.constant 1 : i32
    %c8_i32_16 = arith.constant 8 : i32
    %39 = arith.muli %c1_i32, %c8_i32_16 : i32
    %40 = tpu.assume_multiple %39, 8 : i32
    %41 = arith.truncf %36 : vector<8x32xf32> to vector<8x32xbf16>
    %cst_17 = arith.constant dense<0.000000e+00> : vector<8x96xf32>
    %42 = tpu.matmul %41, %7, %cst_17 {dimension_numbers = #tpu.dot_dimension_numbers<[1], [0], [0], [1], [0, 0, 1, 1], [], []>} : vector<8x32xbf16>, vector<32x96xbf16>, vector<8x96xf32> -> vector<8x96xf32>
    %43 = arith.index_cast %40 : i32 to index
    %c0_18 = arith.constant 0 : index
    %44 = vector.load %arg12[%43, %c0_18] : memref<64x96xf32, #tpu.memory_space<vmem>>, vector<8x96xf32>
    %45 = vector.extract_strided_slice %44 {offsets = [0, 0], sizes = [8, 64], strides = [1, 1]} : vector<8x96xf32> to vector<8x64xf32>
    %46 = vector.extract_strided_slice %42 {offsets = [0, 0], sizes = [8, 64], strides = [1, 1]} : vector<8x96xf32> to vector<8x64xf32>
    %47 = arith.addf %45, %46 : vector<8x64xf32>
    %48 = arith.negf %47 : vector<8x64xf32>
    %49 = math.exp %48 : vector<8x64xf32>
    %cst_19 = arith.constant 1.000000e+00 : f32
    %50 = vector.broadcast %cst_19 : f32 to vector<8x64xf32>
    %51 = arith.addf %50, %49 : vector<8x64xf32>
    %52 = arith.divf %50, %51 : vector<8x64xf32>
    %53 = vector.extract_strided_slice %52 {offsets = [0, 0], sizes = [8, 32], strides = [1, 1]} : vector<8x64xf32> to vector<8x32xf32>
    %54 = vector.extract_strided_slice %52 {offsets = [0, 32], sizes = [8, 32], strides = [1, 1]} : vector<8x64xf32> to vector<8x32xf32>
    %55 = vector.extract_strided_slice %44 {offsets = [0, 64], sizes = [8, 32], strides = [1, 1]} : vector<8x96xf32> to vector<8x32xf32>
    %56 = vector.extract_strided_slice %42 {offsets = [0, 64], sizes = [8, 32], strides = [1, 1]} : vector<8x96xf32> to vector<8x32xf32>
    %57 = arith.addf %56, %10 : vector<8x32xf32>
    %58 = arith.mulf %53, %57 : vector<8x32xf32>
    %59 = arith.addf %55, %58 : vector<8x32xf32>
    %60 = math.tanh %59 : vector<8x32xf32>
    %61 = arith.subf %36, %60 : vector<8x32xf32>
    %62 = arith.mulf %54, %61 : vector<8x32xf32>
    %63 = arith.addf %60, %62 : vector<8x32xf32>
    %64 = arith.index_cast %40 : i32 to index
    %c0_20 = arith.constant 0 : index
    %65 = vector.load %arg13[%64, %c0_20] : memref<64x32xf32, #tpu.memory_space<vmem>>, vector<8x32xf32>
    tpu.vector_store %arg13[%64, %c0_20], %63 {strides = array<i32>} : memref<64x32xf32, #tpu.memory_space<vmem>>, vector<8x32xf32>,
    %c2_i32 = arith.constant 2 : i32
    %c8_i32_21 = arith.constant 8 : i32
    %66 = arith.muli %c2_i32, %c8_i32_21 : i32
    %67 = tpu.assume_multiple %66, 8 : i32
    %68 = arith.truncf %63 : vector<8x32xf32> to vector<8x32xbf16>
    %cst_22 = arith.constant dense<0.000000e+00> : vector<8x96xf32>
    %69 = tpu.matmul %68, %7, %cst_22 {dimension_numbers = #tpu.dot_dimension_numbers<[1], [0], [0], [1], [0, 0, 1, 1], [], []>} : vector<8x32xbf16>, vector<32x96xbf16>, vector<8x96xf32> -> vector<8x96xf32>
    %70 = arith.index_cast %67 : i32 to index
    %c0_23 = arith.constant 0 : index
    %71 = vector.load %arg12[%70, %c0_23] : memref<64x96xf32, #tpu.memory_space<vmem>>, vector<8x96xf32>
    %72 = vector.extract_strided_slice %71 {offsets = [0, 0], sizes = [8, 64], strides = [1, 1]} : vector<8x96xf32> to vector<8x64xf32>
    %73 = vector.extract_strided_slice %69 {offsets = [0, 0], sizes = [8, 64], strides = [1, 1]} : vector<8x96xf32> to vector<8x64xf32>
    %74 = arith.addf %72, %73 : vector<8x64xf32>
    %75 = arith.negf %74 : vector<8x64xf32>
    %76 = math.exp %75 : vector<8x64xf32>
    %cst_24 = arith.constant 1.000000e+00 : f32
    %77 = vector.broadcast %cst_24 : f32 to vector<8x64xf32>
    %78 = arith.addf %77, %76 : vector<8x64xf32>
    %79 = arith.divf %77, %78 : vector<8x64xf32>
    %80 = vector.extract_strided_slice %79 {offsets = [0, 0], sizes = [8, 32], strides = [1, 1]} : vector<8x64xf32> to vector<8x32xf32>
    %81 = vector.extract_strided_slice %79 {offsets = [0, 32], sizes = [8, 32], strides = [1, 1]} : vector<8x64xf32> to vector<8x32xf32>
    %82 = vector.extract_strided_slice %71 {offsets = [0, 64], sizes = [8, 32], strides = [1, 1]} : vector<8x96xf32> to vector<8x32xf32>
    %83 = vector.extract_strided_slice %69 {offsets = [0, 64], sizes = [8, 32], strides = [1, 1]} : vector<8x96xf32> to vector<8x32xf32>
    %84 = arith.addf %83, %10 : vector<8x32xf32>
    %85 = arith.mulf %80, %84 : vector<8x32xf32>
    %86 = arith.addf %82, %85 : vector<8x32xf32>
    %87 = math.tanh %86 : vector<8x32xf32>
    %88 = arith.subf %63, %87 : vector<8x32xf32>
    %89 = arith.mulf %81, %88 : vector<8x32xf32>
    %90 = arith.addf %87, %89 : vector<8x32xf32>
    %91 = arith.index_cast %67 : i32 to index
    %c0_25 = arith.constant 0 : index
    %92 = vector.load %arg13[%91, %c0_25] : memref<64x32xf32, #tpu.memory_space<vmem>>, vector<8x32xf32>
    tpu.vector_store %arg13[%91, %c0_25], %90 {strides = array<i32>} : memref<64x32xf32, #tpu.memory_space<vmem>>, vector<8x32xf32>,
    %c3_i32 = arith.constant 3 : i32
    %c8_i32_26 = arith.constant 8 : i32
    %93 = arith.muli %c3_i32, %c8_i32_26 : i32
    %94 = tpu.assume_multiple %93, 8 : i32
    %95 = arith.truncf %90 : vector<8x32xf32> to vector<8x32xbf16>
    %cst_27 = arith.constant dense<0.000000e+00> : vector<8x96xf32>
    %96 = tpu.matmul %95, %7, %cst_27 {dimension_numbers = #tpu.dot_dimension_numbers<[1], [0], [0], [1], [0, 0, 1, 1], [], []>} : vector<8x32xbf16>, vector<32x96xbf16>, vector<8x96xf32> -> vector<8x96xf32>
    %97 = arith.index_cast %94 : i32 to index
    %c0_28 = arith.constant 0 : index
    %98 = vector.load %arg12[%97, %c0_28] : memref<64x96xf32, #tpu.memory_space<vmem>>, vector<8x96xf32>
    %99 = vector.extract_strided_slice %98 {offsets = [0, 0], sizes = [8, 64], strides = [1, 1]} : vector<8x96xf32> to vector<8x64xf32>
    %100 = vector.extract_strided_slice %96 {offsets = [0, 0], sizes = [8, 64], strides = [1, 1]} : vector<8x96xf32> to vector<8x64xf32>
    %101 = arith.addf %99, %100 : vector<8x64xf32>
    %102 = arith.negf %101 : vector<8x64xf32>
    %103 = math.exp %102 : vector<8x64xf32>
    %cst_29 = arith.constant 1.000000e+00 : f32
    %104 = vector.broadcast %cst_29 : f32 to vector<8x64xf32>
    %105 = arith.addf %104, %103 : vector<8x64xf32>
    %106 = arith.divf %104, %105 : vector<8x64xf32>
    %107 = vector.extract_strided_slice %106 {offsets = [0, 0], sizes = [8, 32], strides = [1, 1]} : vector<8x64xf32> to vector<8x32xf32>
    %108 = vector.extract_strided_slice %106 {offsets = [0, 32], sizes = [8, 32], strides = [1, 1]} : vector<8x64xf32> to vector<8x32xf32>
    %109 = vector.extract_strided_slice %98 {offsets = [0, 64], sizes = [8, 32], strides = [1, 1]} : vector<8x96xf32> to vector<8x32xf32>
    %110 = vector.extract_strided_slice %96 {offsets = [0, 64], sizes = [8, 32], strides = [1, 1]} : vector<8x96xf32> to vector<8x32xf32>
    %111 = arith.addf %110, %10 : vector<8x32xf32>
    %112 = arith.mulf %107, %111 : vector<8x32xf32>
    %113 = arith.addf %109, %112 : vector<8x32xf32>
    %114 = math.tanh %113 : vector<8x32xf32>
    %115 = arith.subf %90, %114 : vector<8x32xf32>
    %116 = arith.mulf %108, %115 : vector<8x32xf32>
    %117 = arith.addf %114, %116 : vector<8x32xf32>
    %118 = arith.index_cast %94 : i32 to index
    %c0_30 = arith.constant 0 : index
    %119 = vector.load %arg13[%118, %c0_30] : memref<64x32xf32, #tpu.memory_space<vmem>>, vector<8x32xf32>
    tpu.vector_store %arg13[%118, %c0_30], %117 {strides = array<i32>} : memref<64x32xf32, #tpu.memory_space<vmem>>, vector<8x32xf32>,
    %c4_i32 = arith.constant 4 : i32
    %c8_i32_31 = arith.constant 8 : i32
    %120 = arith.muli %c4_i32, %c8_i32_31 : i32
    %121 = tpu.assume_multiple %120, 8 : i32
    %122 = arith.truncf %117 : vector<8x32xf32> to vector<8x32xbf16>
    %cst_32 = arith.constant dense<0.000000e+00> : vector<8x96xf32>
    %123 = tpu.matmul %122, %7, %cst_32 {dimension_numbers = #tpu.dot_dimension_numbers<[1], [0], [0], [1], [0, 0, 1, 1], [], []>} : vector<8x32xbf16>, vector<32x96xbf16>, vector<8x96xf32> -> vector<8x96xf32>
    %124 = arith.index_cast %121 : i32 to index
    %c0_33 = arith.constant 0 : index
    %125 = vector.load %arg12[%124, %c0_33] : memref<64x96xf32, #tpu.memory_space<vmem>>, vector<8x96xf32>
    %126 = vector.extract_strided_slice %125 {offsets = [0, 0], sizes = [8, 64], strides = [1, 1]} : vector<8x96xf32> to vector<8x64xf32>
    %127 = vector.extract_strided_slice %123 {offsets = [0, 0], sizes = [8, 64], strides = [1, 1]} : vector<8x96xf32> to vector<8x64xf32>
    %128 = arith.addf %126, %127 : vector<8x64xf32>
    %129 = arith.negf %128 : vector<8x64xf32>
    %130 = math.exp %129 : vector<8x64xf32>
    %cst_34 = arith.constant 1.000000e+00 : f32
    %131 = vector.broadcast %cst_34 : f32 to vector<8x64xf32>
    %132 = arith.addf %131, %130 : vector<8x64xf32>
    %133 = arith.divf %131, %132 : vector<8x64xf32>
    %134 = vector.extract_strided_slice %133 {offsets = [0, 0], sizes = [8, 32], strides = [1, 1]} : vector<8x64xf32> to vector<8x32xf32>
    %135 = vector.extract_strided_slice %133 {offsets = [0, 32], sizes = [8, 32], strides = [1, 1]} : vector<8x64xf32> to vector<8x32xf32>
    %136 = vector.extract_strided_slice %125 {offsets = [0, 64], sizes = [8, 32], strides = [1, 1]} : vector<8x96xf32> to vector<8x32xf32>
    %137 = vector.extract_strided_slice %123 {offsets = [0, 64], sizes = [8, 32], strides = [1, 1]} : vector<8x96xf32> to vector<8x32xf32>
    %138 = arith.addf %137, %10 : vector<8x32xf32>
    %139 = arith.mulf %134, %138 : vector<8x32xf32>
    %140 = arith.addf %136, %139 : vector<8x32xf32>
    %141 = math.tanh %140 : vector<8x32xf32>
    %142 = arith.subf %117, %141 : vector<8x32xf32>
    %143 = arith.mulf %135, %142 : vector<8x32xf32>
    %144 = arith.addf %141, %143 : vector<8x32xf32>
    %145 = arith.index_cast %121 : i32 to index
    %c0_35 = arith.constant 0 : index
    %146 = vector.load %arg13[%145, %c0_35] : memref<64x32xf32, #tpu.memory_space<vmem>>, vector<8x32xf32>
    tpu.vector_store %arg13[%145, %c0_35], %144 {strides = array<i32>} : memref<64x32xf32, #tpu.memory_space<vmem>>, vector<8x32xf32>,
    %c5_i32 = arith.constant 5 : i32
    %c8_i32_36 = arith.constant 8 : i32
    %147 = arith.muli %c5_i32, %c8_i32_36 : i32
    %148 = tpu.assume_multiple %147, 8 : i32
    %149 = arith.truncf %144 : vector<8x32xf32> to vector<8x32xbf16>
    %cst_37 = arith.constant dense<0.000000e+00> : vector<8x96xf32>
    %150 = tpu.matmul %149, %7, %cst_37 {dimension_numbers = #tpu.dot_dimension_numbers<[1], [0], [0], [1], [0, 0, 1, 1], [], []>} : vector<8x32xbf16>, vector<32x96xbf16>, vector<8x96xf32> -> vector<8x96xf32>
    %151 = arith.index_cast %148 : i32 to index
    %c0_38 = arith.constant 0 : index
    %152 = vector.load %arg12[%151, %c0_38] : memref<64x96xf32, #tpu.memory_space<vmem>>, vector<8x96xf32>
    %153 = vector.extract_strided_slice %152 {offsets = [0, 0], sizes = [8, 64], strides = [1, 1]} : vector<8x96xf32> to vector<8x64xf32>
    %154 = vector.extract_strided_slice %150 {offsets = [0, 0], sizes = [8, 64], strides = [1, 1]} : vector<8x96xf32> to vector<8x64xf32>
    %155 = arith.addf %153, %154 : vector<8x64xf32>
    %156 = arith.negf %155 : vector<8x64xf32>
    %157 = math.exp %156 : vector<8x64xf32>
    %cst_39 = arith.constant 1.000000e+00 : f32
    %158 = vector.broadcast %cst_39 : f32 to vector<8x64xf32>
    %159 = arith.addf %158, %157 : vector<8x64xf32>
    %160 = arith.divf %158, %159 : vector<8x64xf32>
    %161 = vector.extract_strided_slice %160 {offsets = [0, 0], sizes = [8, 32], strides = [1, 1]} : vector<8x64xf32> to vector<8x32xf32>
    %162 = vector.extract_strided_slice %160 {offsets = [0, 32], sizes = [8, 32], strides = [1, 1]} : vector<8x64xf32> to vector<8x32xf32>
    %163 = vector.extract_strided_slice %152 {offsets = [0, 64], sizes = [8, 32], strides = [1, 1]} : vector<8x96xf32> to vector<8x32xf32>
    %164 = vector.extract_strided_slice %150 {offsets = [0, 64], sizes = [8, 32], strides = [1, 1]} : vector<8x96xf32> to vector<8x32xf32>
    %165 = arith.addf %164, %10 : vector<8x32xf32>
    %166 = arith.mulf %161, %165 : vector<8x32xf32>
    %167 = arith.addf %163, %166 : vector<8x32xf32>
    %168 = math.tanh %167 : vector<8x32xf32>
    %169 = arith.subf %144, %168 : vector<8x32xf32>
    %170 = arith.mulf %162, %169 : vector<8x32xf32>
    %171 = arith.addf %168, %170 : vector<8x32xf32>
    %172 = arith.index_cast %148 : i32 to index
    %c0_40 = arith.constant 0 : index
    %173 = vector.load %arg13[%172, %c0_40] : memref<64x32xf32, #tpu.memory_space<vmem>>, vector<8x32xf32>
    tpu.vector_store %arg13[%172, %c0_40], %171 {strides = array<i32>} : memref<64x32xf32, #tpu.memory_space<vmem>>, vector<8x32xf32>,
    %c6_i32 = arith.constant 6 : i32
    %c8_i32_41 = arith.constant 8 : i32
    %174 = arith.muli %c6_i32, %c8_i32_41 : i32
    %175 = tpu.assume_multiple %174, 8 : i32
    %176 = arith.truncf %171 : vector<8x32xf32> to vector<8x32xbf16>
    %cst_42 = arith.constant dense<0.000000e+00> : vector<8x96xf32>
    %177 = tpu.matmul %176, %7, %cst_42 {dimension_numbers = #tpu.dot_dimension_numbers<[1], [0], [0], [1], [0, 0, 1, 1], [], []>} : vector<8x32xbf16>, vector<32x96xbf16>, vector<8x96xf32> -> vector<8x96xf32>
    %178 = arith.index_cast %175 : i32 to index
    %c0_43 = arith.constant 0 : index
    %179 = vector.load %arg12[%178, %c0_43] : memref<64x96xf32, #tpu.memory_space<vmem>>, vector<8x96xf32>
    %180 = vector.extract_strided_slice %179 {offsets = [0, 0], sizes = [8, 64], strides = [1, 1]} : vector<8x96xf32> to vector<8x64xf32>
    %181 = vector.extract_strided_slice %177 {offsets = [0, 0], sizes = [8, 64], strides = [1, 1]} : vector<8x96xf32> to vector<8x64xf32>
    %182 = arith.addf %180, %181 : vector<8x64xf32>
    %183 = arith.negf %182 : vector<8x64xf32>
    %184 = math.exp %183 : vector<8x64xf32>
    %cst_44 = arith.constant 1.000000e+00 : f32
    %185 = vector.broadcast %cst_44 : f32 to vector<8x64xf32>
    %186 = arith.addf %185, %184 : vector<8x64xf32>
    %187 = arith.divf %185, %186 : vector<8x64xf32>
    %188 = vector.extract_strided_slice %187 {offsets = [0, 0], sizes = [8, 32], strides = [1, 1]} : vector<8x64xf32> to vector<8x32xf32>
    %189 = vector.extract_strided_slice %187 {offsets = [0, 32], sizes = [8, 32], strides = [1, 1]} : vector<8x64xf32> to vector<8x32xf32>
    %190 = vector.extract_strided_slice %179 {offsets = [0, 64], sizes = [8, 32], strides = [1, 1]} : vector<8x96xf32> to vector<8x32xf32>
    %191 = vector.extract_strided_slice %177 {offsets = [0, 64], sizes = [8, 32], strides = [1, 1]} : vector<8x96xf32> to vector<8x32xf32>
    %192 = arith.addf %191, %10 : vector<8x32xf32>
    %193 = arith.mulf %188, %192 : vector<8x32xf32>
    %194 = arith.addf %190, %193 : vector<8x32xf32>
    %195 = math.tanh %194 : vector<8x32xf32>
    %196 = arith.subf %171, %195 : vector<8x32xf32>
    %197 = arith.mulf %189, %196 : vector<8x32xf32>
    %198 = arith.addf %195, %197 : vector<8x32xf32>
    %199 = arith.index_cast %175 : i32 to index
    %c0_45 = arith.constant 0 : index
    %200 = vector.load %arg13[%199, %c0_45] : memref<64x32xf32, #tpu.memory_space<vmem>>, vector<8x32xf32>
    tpu.vector_store %arg13[%199, %c0_45], %198 {strides = array<i32>} : memref<64x32xf32, #tpu.memory_space<vmem>>, vector<8x32xf32>,
    %c7_i32 = arith.constant 7 : i32
    %c8_i32_46 = arith.constant 8 : i32
    %201 = arith.muli %c7_i32, %c8_i32_46 : i32
    %202 = tpu.assume_multiple %201, 8 : i32
    %203 = arith.truncf %198 : vector<8x32xf32> to vector<8x32xbf16>
    %cst_47 = arith.constant dense<0.000000e+00> : vector<8x96xf32>
    %204 = tpu.matmul %203, %7, %cst_47 {dimension_numbers = #tpu.dot_dimension_numbers<[1], [0], [0], [1], [0, 0, 1, 1], [], []>} : vector<8x32xbf16>, vector<32x96xbf16>, vector<8x96xf32> -> vector<8x96xf32>
    %205 = arith.index_cast %202 : i32 to index
    %c0_48 = arith.constant 0 : index
    %206 = vector.load %arg12[%205, %c0_48] : memref<64x96xf32, #tpu.memory_space<vmem>>, vector<8x96xf32>
    %207 = vector.extract_strided_slice %206 {offsets = [0, 0], sizes = [8, 64], strides = [1, 1]} : vector<8x96xf32> to vector<8x64xf32>
    %208 = vector.extract_strided_slice %204 {offsets = [0, 0], sizes = [8, 64], strides = [1, 1]} : vector<8x96xf32> to vector<8x64xf32>
    %209 = arith.addf %207, %208 : vector<8x64xf32>
    %210 = arith.negf %209 : vector<8x64xf32>
    %211 = math.exp %210 : vector<8x64xf32>
    %cst_49 = arith.constant 1.000000e+00 : f32
    %212 = vector.broadcast %cst_49 : f32 to vector<8x64xf32>
    %213 = arith.addf %212, %211 : vector<8x64xf32>
    %214 = arith.divf %212, %213 : vector<8x64xf32>
    %215 = vector.extract_strided_slice %214 {offsets = [0, 0], sizes = [8, 32], strides = [1, 1]} : vector<8x64xf32> to vector<8x32xf32>
    %216 = vector.extract_strided_slice %214 {offsets = [0, 32], sizes = [8, 32], strides = [1, 1]} : vector<8x64xf32> to vector<8x32xf32>
    %217 = vector.extract_strided_slice %206 {offsets = [0, 64], sizes = [8, 32], strides = [1, 1]} : vector<8x96xf32> to vector<8x32xf32>
    %218 = vector.extract_strided_slice %204 {offsets = [0, 64], sizes = [8, 32], strides = [1, 1]} : vector<8x96xf32> to vector<8x32xf32>
    %219 = arith.addf %218, %10 : vector<8x32xf32>
    %220 = arith.mulf %215, %219 : vector<8x32xf32>
    %221 = arith.addf %217, %220 : vector<8x32xf32>
    %222 = math.tanh %221 : vector<8x32xf32>
    %223 = arith.subf %198, %222 : vector<8x32xf32>
    %224 = arith.mulf %216, %223 : vector<8x32xf32>
    %225 = arith.addf %222, %224 : vector<8x32xf32>
    %226 = arith.index_cast %202 : i32 to index
    %c0_50 = arith.constant 0 : index
    %227 = vector.load %arg13[%226, %c0_50] : memref<64x32xf32, #tpu.memory_space<vmem>>, vector<8x32xf32>
    tpu.vector_store %arg13[%226, %c0_50], %225 {strides = array<i32>} : memref<64x32xf32, #tpu.memory_space<vmem>>, vector<8x32xf32>,
    %c8_i32_51 = arith.constant 8 : i32
    %c0_52 = arith.constant 0 : index
    %c0_53 = arith.constant 0 : index
    %228 = vector.load %arg13[%c0_52, %c0_53] : memref<64x32xf32, #tpu.memory_space<vmem>>, vector<64x32xf32>
    %229 = arith.truncf %228 : vector<64x32xf32> to vector<64x32xbf16>
    %c0_54 = arith.constant 0 : index
    %c0_55 = arith.constant 0 : index
    %230 = vector.load %arg5[%c0_54, %c0_55] : memref<32x96xbf16, #tpu.memory_space<vmem>>, vector<32x96xbf16>
    %cst_56 = arith.constant dense<0.000000e+00> : vector<64x96xf32>
    %231 = tpu.matmul %229, %230, %cst_56 {dimension_numbers = #tpu.dot_dimension_numbers<[1], [0], [0], [1], [0, 0, 1, 1], [], []>} : vector<64x32xbf16>, vector<32x96xbf16>, vector<64x96xf32> -> vector<64x96xf32>
    %c0_57 = arith.constant 0 : index
    %c0_58 = arith.constant 0 : index
    %232 = vector.load %arg7[%c0_57, %c0_58] : memref<1x96xf32, #tpu.memory_space<vmem>>, vector<1x96xf32>
    %233 = vector.broadcast %232 : vector<1x96xf32> to vector<64x96xf32>
    %234 = arith.addf %231, %233 : vector<64x96xf32>
    %c0_59 = arith.constant 0 : index
    %c0_60 = arith.constant 0 : index
    %235 = vector.load %arg12[%c0_59, %c0_60] : memref<64x96xf32, #tpu.memory_space<vmem>>, vector<64x96xf32>
    tpu.vector_store %arg12[%c0_59, %c0_60], %234 {strides = array<i32>} : memref<64x96xf32, #tpu.memory_space<vmem>>, vector<64x96xf32>,
    %c0_61 = arith.constant 0 : index
    %c0_62 = arith.constant 0 : index
    %236 = vector.load %arg6[%c0_61, %c0_62] : memref<32x96xbf16, #tpu.memory_space<vmem>>, vector<32x96xbf16>
    %c0_63 = arith.constant 0 : index
    %c0_64 = arith.constant 0 : index
    %237 = vector.load %arg8[%c0_63, %c0_64] : memref<1x32xf32, #tpu.memory_space<vmem>>, vector<1x32xf32>
    %238 = vector.shape_cast %237 : vector<1x32xf32> to vector<1x32xf32>
    %239 = vector.broadcast %238 : vector<1x32xf32> to vector<8x32xf32>
    %cst_65 = arith.constant 0.000000e+00 : f32
    %240 = vector.broadcast %cst_65 : f32 to vector<8x32xf32>
    %c0_i32_66 = arith.constant 0 : i32
    %c8_i32_67 = arith.constant 8 : i32
    %241 = arith.muli %c0_i32_66, %c8_i32_67 : i32
    %242 = tpu.assume_multiple %241, 8 : i32
    %243 = arith.truncf %240 : vector<8x32xf32> to vector<8x32xbf16>
    %cst_68 = arith.constant dense<0.000000e+00> : vector<8x96xf32>
    %244 = tpu.matmul %243, %236, %cst_68 {dimension_numbers = #tpu.dot_dimension_numbers<[1], [0], [0], [1], [0, 0, 1, 1], [], []>} : vector<8x32xbf16>, vector<32x96xbf16>, vector<8x96xf32> -> vector<8x96xf32>
    %245 = arith.index_cast %242 : i32 to index
    %c0_69 = arith.constant 0 : index
    %246 = vector.load %arg12[%245, %c0_69] : memref<64x96xf32, #tpu.memory_space<vmem>>, vector<8x96xf32>
    %247 = vector.extract_strided_slice %246 {offsets = [0, 0], sizes = [8, 64], strides = [1, 1]} : vector<8x96xf32> to vector<8x64xf32>
    %248 = vector.extract_strided_slice %244 {offsets = [0, 0], sizes = [8, 64], strides = [1, 1]} : vector<8x96xf32> to vector<8x64xf32>
    %249 = arith.addf %247, %248 : vector<8x64xf32>
    %250 = arith.negf %249 : vector<8x64xf32>
    %251 = math.exp %250 : vector<8x64xf32>
    %cst_70 = arith.constant 1.000000e+00 : f32
    %252 = vector.broadcast %cst_70 : f32 to vector<8x64xf32>
    %253 = arith.addf %252, %251 : vector<8x64xf32>
    %254 = arith.divf %252, %253 : vector<8x64xf32>
    %255 = vector.extract_strided_slice %254 {offsets = [0, 0], sizes = [8, 32], strides = [1, 1]} : vector<8x64xf32> to vector<8x32xf32>
    %256 = vector.extract_strided_slice %254 {offsets = [0, 32], sizes = [8, 32], strides = [1, 1]} : vector<8x64xf32> to vector<8x32xf32>
    %257 = vector.extract_strided_slice %246 {offsets = [0, 64], sizes = [8, 32], strides = [1, 1]} : vector<8x96xf32> to vector<8x32xf32>
    %258 = vector.extract_strided_slice %244 {offsets = [0, 64], sizes = [8, 32], strides = [1, 1]} : vector<8x96xf32> to vector<8x32xf32>
    %259 = arith.addf %258, %239 : vector<8x32xf32>
    %260 = arith.mulf %255, %259 : vector<8x32xf32>
    %261 = arith.addf %257, %260 : vector<8x32xf32>
    %262 = math.tanh %261 : vector<8x32xf32>
    %263 = arith.subf %240, %262 : vector<8x32xf32>
    %264 = arith.mulf %256, %263 : vector<8x32xf32>
    %265 = arith.addf %262, %264 : vector<8x32xf32>
    %c1_i32_71 = arith.constant 1 : i32
    %c8_i32_72 = arith.constant 8 : i32
    %266 = arith.muli %c1_i32_71, %c8_i32_72 : i32
    %267 = tpu.assume_multiple %266, 8 : i32
    %268 = arith.truncf %265 : vector<8x32xf32> to vector<8x32xbf16>
    %cst_73 = arith.constant dense<0.000000e+00> : vector<8x96xf32>
    %269 = tpu.matmul %268, %236, %cst_73 {dimension_numbers = #tpu.dot_dimension_numbers<[1], [0], [0], [1], [0, 0, 1, 1], [], []>} : vector<8x32xbf16>, vector<32x96xbf16>, vector<8x96xf32> -> vector<8x96xf32>
    %270 = arith.index_cast %267 : i32 to index
    %c0_74 = arith.constant 0 : index
    %271 = vector.load %arg12[%270, %c0_74] : memref<64x96xf32, #tpu.memory_space<vmem>>, vector<8x96xf32>
    %272 = vector.extract_strided_slice %271 {offsets = [0, 0], sizes = [8, 64], strides = [1, 1]} : vector<8x96xf32> to vector<8x64xf32>
    %273 = vector.extract_strided_slice %269 {offsets = [0, 0], sizes = [8, 64], strides = [1, 1]} : vector<8x96xf32> to vector<8x64xf32>
    %274 = arith.addf %272, %273 : vector<8x64xf32>
    %275 = arith.negf %274 : vector<8x64xf32>
    %276 = math.exp %275 : vector<8x64xf32>
    %cst_75 = arith.constant 1.000000e+00 : f32
    %277 = vector.broadcast %cst_75 : f32 to vector<8x64xf32>
    %278 = arith.addf %277, %276 : vector<8x64xf32>
    %279 = arith.divf %277, %278 : vector<8x64xf32>
    %280 = vector.extract_strided_slice %279 {offsets = [0, 0], sizes = [8, 32], strides = [1, 1]} : vector<8x64xf32> to vector<8x32xf32>
    %281 = vector.extract_strided_slice %279 {offsets = [0, 32], sizes = [8, 32], strides = [1, 1]} : vector<8x64xf32> to vector<8x32xf32>
    %282 = vector.extract_strided_slice %271 {offsets = [0, 64], sizes = [8, 32], strides = [1, 1]} : vector<8x96xf32> to vector<8x32xf32>
    %283 = vector.extract_strided_slice %269 {offsets = [0, 64], sizes = [8, 32], strides = [1, 1]} : vector<8x96xf32> to vector<8x32xf32>
    %284 = arith.addf %283, %239 : vector<8x32xf32>
    %285 = arith.mulf %280, %284 : vector<8x32xf32>
    %286 = arith.addf %282, %285 : vector<8x32xf32>
    %287 = math.tanh %286 : vector<8x32xf32>
    %288 = arith.subf %265, %287 : vector<8x32xf32>
    %289 = arith.mulf %281, %288 : vector<8x32xf32>
    %290 = arith.addf %287, %289 : vector<8x32xf32>
    %c2_i32_76 = arith.constant 2 : i32
    %c8_i32_77 = arith.constant 8 : i32
    %291 = arith.muli %c2_i32_76, %c8_i32_77 : i32
    %292 = tpu.assume_multiple %291, 8 : i32
    %293 = arith.truncf %290 : vector<8x32xf32> to vector<8x32xbf16>
    %cst_78 = arith.constant dense<0.000000e+00> : vector<8x96xf32>
    %294 = tpu.matmul %293, %236, %cst_78 {dimension_numbers = #tpu.dot_dimension_numbers<[1], [0], [0], [1], [0, 0, 1, 1], [], []>} : vector<8x32xbf16>, vector<32x96xbf16>, vector<8x96xf32> -> vector<8x96xf32>
    %295 = arith.index_cast %292 : i32 to index
    %c0_79 = arith.constant 0 : index
    %296 = vector.load %arg12[%295, %c0_79] : memref<64x96xf32, #tpu.memory_space<vmem>>, vector<8x96xf32>
    %297 = vector.extract_strided_slice %296 {offsets = [0, 0], sizes = [8, 64], strides = [1, 1]} : vector<8x96xf32> to vector<8x64xf32>
    %298 = vector.extract_strided_slice %294 {offsets = [0, 0], sizes = [8, 64], strides = [1, 1]} : vector<8x96xf32> to vector<8x64xf32>
    %299 = arith.addf %297, %298 : vector<8x64xf32>
    %300 = arith.negf %299 : vector<8x64xf32>
    %301 = math.exp %300 : vector<8x64xf32>
    %cst_80 = arith.constant 1.000000e+00 : f32
    %302 = vector.broadcast %cst_80 : f32 to vector<8x64xf32>
    %303 = arith.addf %302, %301 : vector<8x64xf32>
    %304 = arith.divf %302, %303 : vector<8x64xf32>
    %305 = vector.extract_strided_slice %304 {offsets = [0, 0], sizes = [8, 32], strides = [1, 1]} : vector<8x64xf32> to vector<8x32xf32>
    %306 = vector.extract_strided_slice %304 {offsets = [0, 32], sizes = [8, 32], strides = [1, 1]} : vector<8x64xf32> to vector<8x32xf32>
    %307 = vector.extract_strided_slice %296 {offsets = [0, 64], sizes = [8, 32], strides = [1, 1]} : vector<8x96xf32> to vector<8x32xf32>
    %308 = vector.extract_strided_slice %294 {offsets = [0, 64], sizes = [8, 32], strides = [1, 1]} : vector<8x96xf32> to vector<8x32xf32>
    %309 = arith.addf %308, %239 : vector<8x32xf32>
    %310 = arith.mulf %305, %309 : vector<8x32xf32>
    %311 = arith.addf %307, %310 : vector<8x32xf32>
    %312 = math.tanh %311 : vector<8x32xf32>
    %313 = arith.subf %290, %312 : vector<8x32xf32>
    %314 = arith.mulf %306, %313 : vector<8x32xf32>
    %315 = arith.addf %312, %314 : vector<8x32xf32>
    %c3_i32_81 = arith.constant 3 : i32
    %c8_i32_82 = arith.constant 8 : i32
    %316 = arith.muli %c3_i32_81, %c8_i32_82 : i32
    %317 = tpu.assume_multiple %316, 8 : i32
    %318 = arith.truncf %315 : vector<8x32xf32> to vector<8x32xbf16>
    %cst_83 = arith.constant dense<0.000000e+00> : vector<8x96xf32>
    %319 = tpu.matmul %318, %236, %cst_83 {dimension_numbers = #tpu.dot_dimension_numbers<[1], [0], [0], [1], [0, 0, 1, 1], [], []>} : vector<8x32xbf16>, vector<32x96xbf16>, vector<8x96xf32> -> vector<8x96xf32>
    %320 = arith.index_cast %317 : i32 to index
    %c0_84 = arith.constant 0 : index
    %321 = vector.load %arg12[%320, %c0_84] : memref<64x96xf32, #tpu.memory_space<vmem>>, vector<8x96xf32>
    %322 = vector.extract_strided_slice %321 {offsets = [0, 0], sizes = [8, 64], strides = [1, 1]} : vector<8x96xf32> to vector<8x64xf32>
    %323 = vector.extract_strided_slice %319 {offsets = [0, 0], sizes = [8, 64], strides = [1, 1]} : vector<8x96xf32> to vector<8x64xf32>
    %324 = arith.addf %322, %323 : vector<8x64xf32>
    %325 = arith.negf %324 : vector<8x64xf32>
    %326 = math.exp %325 : vector<8x64xf32>
    %cst_85 = arith.constant 1.000000e+00 : f32
    %327 = vector.broadcast %cst_85 : f32 to vector<8x64xf32>
    %328 = arith.addf %327, %326 : vector<8x64xf32>
    %329 = arith.divf %327, %328 : vector<8x64xf32>
    %330 = vector.extract_strided_slice %329 {offsets = [0, 0], sizes = [8, 32], strides = [1, 1]} : vector<8x64xf32> to vector<8x32xf32>
    %331 = vector.extract_strided_slice %329 {offsets = [0, 32], sizes = [8, 32], strides = [1, 1]} : vector<8x64xf32> to vector<8x32xf32>
    %332 = vector.extract_strided_slice %321 {offsets = [0, 64], sizes = [8, 32], strides = [1, 1]} : vector<8x96xf32> to vector<8x32xf32>
    %333 = vector.extract_strided_slice %319 {offsets = [0, 64], sizes = [8, 32], strides = [1, 1]} : vector<8x96xf32> to vector<8x32xf32>
    %334 = arith.addf %333, %239 : vector<8x32xf32>
    %335 = arith.mulf %330, %334 : vector<8x32xf32>
    %336 = arith.addf %332, %335 : vector<8x32xf32>
    %337 = math.tanh %336 : vector<8x32xf32>
    %338 = arith.subf %315, %337 : vector<8x32xf32>
    %339 = arith.mulf %331, %338 : vector<8x32xf32>
    %340 = arith.addf %337, %339 : vector<8x32xf32>
    %c4_i32_86 = arith.constant 4 : i32
    %c8_i32_87 = arith.constant 8 : i32
    %341 = arith.muli %c4_i32_86, %c8_i32_87 : i32
    %342 = tpu.assume_multiple %341, 8 : i32
    %343 = arith.truncf %340 : vector<8x32xf32> to vector<8x32xbf16>
    %cst_88 = arith.constant dense<0.000000e+00> : vector<8x96xf32>
    %344 = tpu.matmul %343, %236, %cst_88 {dimension_numbers = #tpu.dot_dimension_numbers<[1], [0], [0], [1], [0, 0, 1, 1], [], []>} : vector<8x32xbf16>, vector<32x96xbf16>, vector<8x96xf32> -> vector<8x96xf32>
    %345 = arith.index_cast %342 : i32 to index
    %c0_89 = arith.constant 0 : index
    %346 = vector.load %arg12[%345, %c0_89] : memref<64x96xf32, #tpu.memory_space<vmem>>, vector<8x96xf32>
    %347 = vector.extract_strided_slice %346 {offsets = [0, 0], sizes = [8, 64], strides = [1, 1]} : vector<8x96xf32> to vector<8x64xf32>
    %348 = vector.extract_strided_slice %344 {offsets = [0, 0], sizes = [8, 64], strides = [1, 1]} : vector<8x96xf32> to vector<8x64xf32>
    %349 = arith.addf %347, %348 : vector<8x64xf32>
    %350 = arith.negf %349 : vector<8x64xf32>
    %351 = math.exp %350 : vector<8x64xf32>
    %cst_90 = arith.constant 1.000000e+00 : f32
    %352 = vector.broadcast %cst_90 : f32 to vector<8x64xf32>
    %353 = arith.addf %352, %351 : vector<8x64xf32>
    %354 = arith.divf %352, %353 : vector<8x64xf32>
    %355 = vector.extract_strided_slice %354 {offsets = [0, 0], sizes = [8, 32], strides = [1, 1]} : vector<8x64xf32> to vector<8x32xf32>
    %356 = vector.extract_strided_slice %354 {offsets = [0, 32], sizes = [8, 32], strides = [1, 1]} : vector<8x64xf32> to vector<8x32xf32>
    %357 = vector.extract_strided_slice %346 {offsets = [0, 64], sizes = [8, 32], strides = [1, 1]} : vector<8x96xf32> to vector<8x32xf32>
    %358 = vector.extract_strided_slice %344 {offsets = [0, 64], sizes = [8, 32], strides = [1, 1]} : vector<8x96xf32> to vector<8x32xf32>
    %359 = arith.addf %358, %239 : vector<8x32xf32>
    %360 = arith.mulf %355, %359 : vector<8x32xf32>
    %361 = arith.addf %357, %360 : vector<8x32xf32>
    %362 = math.tanh %361 : vector<8x32xf32>
    %363 = arith.subf %340, %362 : vector<8x32xf32>
    %364 = arith.mulf %356, %363 : vector<8x32xf32>
    %365 = arith.addf %362, %364 : vector<8x32xf32>
    %c5_i32_91 = arith.constant 5 : i32
    %c8_i32_92 = arith.constant 8 : i32
    %366 = arith.muli %c5_i32_91, %c8_i32_92 : i32
    %367 = tpu.assume_multiple %366, 8 : i32
    %368 = arith.truncf %365 : vector<8x32xf32> to vector<8x32xbf16>
    %cst_93 = arith.constant dense<0.000000e+00> : vector<8x96xf32>
    %369 = tpu.matmul %368, %236, %cst_93 {dimension_numbers = #tpu.dot_dimension_numbers<[1], [0], [0], [1], [0, 0, 1, 1], [], []>} : vector<8x32xbf16>, vector<32x96xbf16>, vector<8x96xf32> -> vector<8x96xf32>
    %370 = arith.index_cast %367 : i32 to index
    %c0_94 = arith.constant 0 : index
    %371 = vector.load %arg12[%370, %c0_94] : memref<64x96xf32, #tpu.memory_space<vmem>>, vector<8x96xf32>
    %372 = vector.extract_strided_slice %371 {offsets = [0, 0], sizes = [8, 64], strides = [1, 1]} : vector<8x96xf32> to vector<8x64xf32>
    %373 = vector.extract_strided_slice %369 {offsets = [0, 0], sizes = [8, 64], strides = [1, 1]} : vector<8x96xf32> to vector<8x64xf32>
    %374 = arith.addf %372, %373 : vector<8x64xf32>
    %375 = arith.negf %374 : vector<8x64xf32>
    %376 = math.exp %375 : vector<8x64xf32>
    %cst_95 = arith.constant 1.000000e+00 : f32
    %377 = vector.broadcast %cst_95 : f32 to vector<8x64xf32>
    %378 = arith.addf %377, %376 : vector<8x64xf32>
    %379 = arith.divf %377, %378 : vector<8x64xf32>
    %380 = vector.extract_strided_slice %379 {offsets = [0, 0], sizes = [8, 32], strides = [1, 1]} : vector<8x64xf32> to vector<8x32xf32>
    %381 = vector.extract_strided_slice %379 {offsets = [0, 32], sizes = [8, 32], strides = [1, 1]} : vector<8x64xf32> to vector<8x32xf32>
    %382 = vector.extract_strided_slice %371 {offsets = [0, 64], sizes = [8, 32], strides = [1, 1]} : vector<8x96xf32> to vector<8x32xf32>
    %383 = vector.extract_strided_slice %369 {offsets = [0, 64], sizes = [8, 32], strides = [1, 1]} : vector<8x96xf32> to vector<8x32xf32>
    %384 = arith.addf %383, %239 : vector<8x32xf32>
    %385 = arith.mulf %380, %384 : vector<8x32xf32>
    %386 = arith.addf %382, %385 : vector<8x32xf32>
    %387 = math.tanh %386 : vector<8x32xf32>
    %388 = arith.subf %365, %387 : vector<8x32xf32>
    %389 = arith.mulf %381, %388 : vector<8x32xf32>
    %390 = arith.addf %387, %389 : vector<8x32xf32>
    %c6_i32_96 = arith.constant 6 : i32
    %c8_i32_97 = arith.constant 8 : i32
    %391 = arith.muli %c6_i32_96, %c8_i32_97 : i32
    %392 = tpu.assume_multiple %391, 8 : i32
    %393 = arith.truncf %390 : vector<8x32xf32> to vector<8x32xbf16>
    %cst_98 = arith.constant dense<0.000000e+00> : vector<8x96xf32>
    %394 = tpu.matmul %393, %236, %cst_98 {dimension_numbers = #tpu.dot_dimension_numbers<[1], [0], [0], [1], [0, 0, 1, 1], [], []>} : vector<8x32xbf16>, vector<32x96xbf16>, vector<8x96xf32> -> vector<8x96xf32>
    %395 = arith.index_cast %392 : i32 to index
    %c0_99 = arith.constant 0 : index
    %396 = vector.load %arg12[%395, %c0_99] : memref<64x96xf32, #tpu.memory_space<vmem>>, vector<8x96xf32>
    %397 = vector.extract_strided_slice %396 {offsets = [0, 0], sizes = [8, 64], strides = [1, 1]} : vector<8x96xf32> to vector<8x64xf32>
    %398 = vector.extract_strided_slice %394 {offsets = [0, 0], sizes = [8, 64], strides = [1, 1]} : vector<8x96xf32> to vector<8x64xf32>
    %399 = arith.addf %397, %398 : vector<8x64xf32>
    %400 = arith.negf %399 : vector<8x64xf32>
    %401 = math.exp %400 : vector<8x64xf32>
    %cst_100 = arith.constant 1.000000e+00 : f32
    %402 = vector.broadcast %cst_100 : f32 to vector<8x64xf32>
    %403 = arith.addf %402, %401 : vector<8x64xf32>
    %404 = arith.divf %402, %403 : vector<8x64xf32>
    %405 = vector.extract_strided_slice %404 {offsets = [0, 0], sizes = [8, 32], strides = [1, 1]} : vector<8x64xf32> to vector<8x32xf32>
    %406 = vector.extract_strided_slice %404 {offsets = [0, 32], sizes = [8, 32], strides = [1, 1]} : vector<8x64xf32> to vector<8x32xf32>
    %407 = vector.extract_strided_slice %396 {offsets = [0, 64], sizes = [8, 32], strides = [1, 1]} : vector<8x96xf32> to vector<8x32xf32>
    %408 = vector.extract_strided_slice %394 {offsets = [0, 64], sizes = [8, 32], strides = [1, 1]} : vector<8x96xf32> to vector<8x32xf32>
    %409 = arith.addf %408, %239 : vector<8x32xf32>
    %410 = arith.mulf %405, %409 : vector<8x32xf32>
    %411 = arith.addf %407, %410 : vector<8x32xf32>
    %412 = math.tanh %411 : vector<8x32xf32>
    %413 = arith.subf %390, %412 : vector<8x32xf32>
    %414 = arith.mulf %406, %413 : vector<8x32xf32>
    %415 = arith.addf %412, %414 : vector<8x32xf32>
    %c7_i32_101 = arith.constant 7 : i32
    %c8_i32_102 = arith.constant 8 : i32
    %416 = arith.muli %c7_i32_101, %c8_i32_102 : i32
    %417 = tpu.assume_multiple %416, 8 : i32
    %418 = arith.truncf %415 : vector<8x32xf32> to vector<8x32xbf16>
    %cst_103 = arith.constant dense<0.000000e+00> : vector<8x96xf32>
    %419 = tpu.matmul %418, %236, %cst_103 {dimension_numbers = #tpu.dot_dimension_numbers<[1], [0], [0], [1], [0, 0, 1, 1], [], []>} : vector<8x32xbf16>, vector<32x96xbf16>, vector<8x96xf32> -> vector<8x96xf32>
    %420 = arith.index_cast %417 : i32 to index
    %c0_104 = arith.constant 0 : index
    %421 = vector.load %arg12[%420, %c0_104] : memref<64x96xf32, #tpu.memory_space<vmem>>, vector<8x96xf32>
    %422 = vector.extract_strided_slice %421 {offsets = [0, 0], sizes = [8, 64], strides = [1, 1]} : vector<8x96xf32> to vector<8x64xf32>
    %423 = vector.extract_strided_slice %419 {offsets = [0, 0], sizes = [8, 64], strides = [1, 1]} : vector<8x96xf32> to vector<8x64xf32>
    %424 = arith.addf %422, %423 : vector<8x64xf32>
    %425 = arith.negf %424 : vector<8x64xf32>
    %426 = math.exp %425 : vector<8x64xf32>
    %cst_105 = arith.constant 1.000000e+00 : f32
    %427 = vector.broadcast %cst_105 : f32 to vector<8x64xf32>
    %428 = arith.addf %427, %426 : vector<8x64xf32>
    %429 = arith.divf %427, %428 : vector<8x64xf32>
    %430 = vector.extract_strided_slice %429 {offsets = [0, 0], sizes = [8, 32], strides = [1, 1]} : vector<8x64xf32> to vector<8x32xf32>
    %431 = vector.extract_strided_slice %429 {offsets = [0, 32], sizes = [8, 32], strides = [1, 1]} : vector<8x64xf32> to vector<8x32xf32>
    %432 = vector.extract_strided_slice %421 {offsets = [0, 64], sizes = [8, 32], strides = [1, 1]} : vector<8x96xf32> to vector<8x32xf32>
    %433 = vector.extract_strided_slice %419 {offsets = [0, 64], sizes = [8, 32], strides = [1, 1]} : vector<8x96xf32> to vector<8x32xf32>
    %434 = arith.addf %433, %239 : vector<8x32xf32>
    %435 = arith.mulf %430, %434 : vector<8x32xf32>
    %436 = arith.addf %432, %435 : vector<8x32xf32>
    %437 = math.tanh %436 : vector<8x32xf32>
    %438 = arith.subf %415, %437 : vector<8x32xf32>
    %439 = arith.mulf %431, %438 : vector<8x32xf32>
    %440 = arith.addf %437, %439 : vector<8x32xf32>
    %c8_i32_106 = arith.constant 8 : i32
    %441 = arith.truncf %440 : vector<8x32xf32> to vector<8x32xbf16>
    %c0_107 = arith.constant 0 : index
    %c0_108 = arith.constant 0 : index
    %442 = vector.load %arg9[%c0_107, %c0_108] : memref<32x2xbf16, #tpu.memory_space<vmem>>, vector<32x2xbf16>
    %cst_109 = arith.constant dense<0.000000e+00> : vector<8x2xf32>
    %443 = tpu.matmul %441, %442, %cst_109 {dimension_numbers = #tpu.dot_dimension_numbers<[1], [0], [0], [1], [0, 0, 1, 1], [], []>} : vector<8x32xbf16>, vector<32x2xbf16>, vector<8x2xf32> -> vector<8x2xf32>
    %c0_110 = arith.constant 0 : index
    %c0_111 = arith.constant 0 : index
    %444 = vector.load %arg10[%c0_110, %c0_111] : memref<1x2xf32, #tpu.memory_space<vmem>>, vector<1x2xf32>
    %445 = vector.broadcast %444 : vector<1x2xf32> to vector<8x2xf32>
    %446 = arith.addf %443, %445 : vector<8x2xf32>
    %c0_112 = arith.constant 0 : index
    %c0_113 = arith.constant 0 : index
    %447 = vector.load %arg11[%c0_112, %c0_113] : memref<8x2xf32, #tpu.memory_space<vmem>>, vector<8x2xf32>
    tpu.vector_store %arg11[%c0_112, %c0_113], %446 {strides = array<i32>} : memref<8x2xf32, #tpu.memory_space<vmem>>, vector<8x2xf32>,
    return
  }
}

</mosaic_0001>

<bundles_post_ra>
// kernel: gru_model_forward.1
= control target key start
LH: loop header
LB: loop body
LE: loop exit
PB: predicated region body
PF: predicated region fallthrough
CT: control target
= control target key end

     0   :  { %v2099_v0 = vmov 0.0   ;;  %vm2100_vm0 = vmmov 0   ;;  %vm82_vm1 = vcmask 130048   ;;  %s2101_s28 = smov 64   ;;  %v2102_v7 = vmov 0   ;;  %s2104_s29 = smov 32   ;;  %s2550_s1 = inlined_call_operand.vmem [shape: bf16[16,96], index: 1, kind: input, shape index: {}]   ;;  %s2551_s2 = inlined_call_operand.vmem [shape: bf16[32,96], index: 2, kind: input, shape index: {}]   ;;  %s2552_s0 = inlined_call_operand.vmem [shape: bf16[64,16], index: 0, kind: input, shape index: {}]   ;;  %s2553_s4 = inlined_call_operand.vmem [shape: f32[1,32], index: 4, kind: input, shape index: {}]   ;;  %s2554_s3 = inlined_call_operand.vmem [shape: f32[1,96], index: 3, kind: input, shape index: {}]   ;;  %s2555_s6 = inlined_call_operand.vmem [shape: bf16[32,96], index: 6, kind: input, shape index: {}]   ;;  %s2556_s5 = inlined_call_operand.vmem [shape: bf16[32,96], index: 5, kind: input, shape index: {}]   ;;  %s2557_s8 = inlined_call_operand.vmem [shape: f32[1,32], index: 8, kind: input, shape index: {}]   ;;  %s2558_s7 = inlined_call_operand.vmem [shape: f32[1,96], index: 7, kind: input, shape index: {}]   ;;  %s2559_s9 = inlined_call_operand.vmem [shape: bf16[32,2], index: 9, kind: input, shape index: {}]   ;;  %s2560_s10 = inlined_call_operand.vmem [shape: f32[1,2], index: 10, kind: input, shape index: {}]   ;;  %s2561_s11 = inlined_call_operand.vmem [shape: f32[8,2], index: 11, kind: output, shape index: {}]  }
   0x1   :  { %1836 = vmatprep.subr.bf16.mxu1 %v2099_v0  ;;  %v1990_v1 = vld [vmem:[%s2550_s1] sm:$0xff]   ;;  %1840 = vmatprep.mubr.msk.bf16.mxu1 %vm2100_vm0, %v2099_v0  ;;  %v1993_v4 = vld [vmem:[%s2552_s0 + $0x8] sm:$0xff]   ;;  %vm160_vm2 = vcmask 785408   ;;  %vm191_vm3 = vcmask 261120   ;;  %v1995_v58 = vld [vmem:[%s2552_s0 + $0x10] sm:$0xff]   ;;  %vm1701_vm4 = vcmask 15360  }
   0x2   :  { %v2174_v2 = vld [vmem:[%s2551_s2] sm:$0xff]   ;;  %1826 = vmatprep.subr.bf16.mxu0 %v1990_v1  ;;  %v2188_v5 = vld [vmem:[%s2551_s2 + $0x8] sm:$0xff]   ;;  %v1996_v59 = vld [vmem:[%s2552_s0 + $0x18] sm:$0xff]  }
   0x3   :  { %v1992_v3 = vld [vmem:[%s2552_s0] sm:$0xff]   ;;  %1837 = vmatpush3.bf16.msra.mxu1 %v2174_v2  ;;  %1827 = vmatpush3.bf16.msra.mxu0 %v1990_v1 }
   0x4   :  { %1828 = vmatprep.mubr.msk.bf16.mxu0 %vm82_vm1, %v1992_v3  ;;  %1838 = vmatprep.subr.bf16.mxu1 %v2099_v0  ;;  %v1717_v6 = vld [vmem:[%s2553_s4] ss:$0 sm:$0xff] }
   0x5   :  { %1852 = vmatprep.subr.bf16.mxu0 %v2099_v0  ;;  %243 = vrot.lane.b32.xlu0 %v1717_v6, %s2101_s28  ;;  %v2212_v8 = vld [vmem:[%s2554_s3] ss:$0 sm:$0xff]  ;;  %s2103_s3 = smov 96  }
   0x6   :  { %1829 = vmatmul.mubr.msk.bf16.vlgmr.msra.gmra.mrb[0].mxu0 %vm82_vm1, %v1993_v4 }
   0x7   :  { %1839 = vmatpush3.bf16.msra.mxu1 %v2188_v5  ;;  %1853 = vmatpush3.bf16.msra.mxu0 %v2174_v2 }
   0x8   :  { %1844 = vmatprep.subr.bf16.mxu1 %v2099_v0  ;;  %1854 = vmatprep.subr.bf16.mxu0 %v2099_v0 }
   0x9   :  { %1832 = vmatprep.mubr.msk.bf16.mxu0 %vm82_vm1, %v1995_v58 }
   0xa   :  { %1841 = vmatmul.mubr.bf16.vlgmr.msra.gmra.mrb[0].mxu1 %v2102_v7 }
   0xb   :  { %1845 = vmatpush3.bf16.msra.mxu1 %v2174_v2  ;;  %1848 = vmatprep.mubr.msk.bf16.mxu1 %vm2100_vm0, %v2099_v0 }
   0xc   :  { %1846 = vmatprep.subr.bf16.mxu1 %v2099_v0  ;;  %1855 = vmatpush3.bf16.msra.mxu0 %v2188_v5 }
   0xd   :  { %1868 = vmatprep.subr.bf16.mxu0 %v2099_v0 }
   0xe   :  { %1833 = vmatmul.mubr.msk.bf16.gmra.mrb[4].mxu0 %vm82_vm1, %v1996_v59 }
   0xf   :  { %1847 = vmatpush3.bf16.msra.mxu1 %v2188_v5  ;;  %1856 = vmatprep.mubr.msk.bf16.mxu0 %vm2100_vm0, %v2099_v0 }
  0x10   :  { %1860 = vmatprep.subr.bf16.mxu1 %v2099_v0 }
  0x77   :  { %v2216_v13 = vpop.permute.xlu0 %243 }
  0xd9   :  { %v1830_v9 = vpop.f32.mrb[0].mxu0 }
  0xda   :  { %v138_v10 = vadd.f32 %v1830_v9, %v2212_v8  ;;  %v129_v11 = vpop.f32.mrb[1].mxu0 }
  0xdb   :  { %v130_v12 = vadd.f32 %v2212_v8, %v129_v11  ;;  %v1831_v14 = vpop.f32.mrb[2].mxu0 }
  0xdc   :  { %163 = vst.msk [vmem:[#allocation2 + $0x10] sm:$0xff] %vm160_vm2, %v138_v10  ;;  %v141_v15 = vadd.f32 %v1831_v14, %v2212_v8  ;;  %v132_v16 = vpop.f32.mrb[3].mxu0 }
  0xdd   :  { %161 = vst.msk [vmem:[#allocation2] sm:$0xff] %vm160_vm2, %v130_v12  ;;  %v229_v17 = vpop.f32.mrb[0].mxu1  ;;  %v133_v18 = vadd.f32 %v2212_v8, %v132_v16 }
  0xde   :  { %v246_v19 = vadd.f32 %v2216_v13, %v229_v17  ;;  %v1842_v20 = vpop.f32.mrb[1].mxu1  ;;  %164 = vst.msk [vmem:[#allocation2 + $0x18] sm:$0xff] %vm160_vm2, %v141_v15 }
  0xdf   :  { %v232_v21 = vpop.f32.mrb[2].mxu1  ;;  %162 = vst.msk [vmem:[#allocation2 + $0x8] sm:$0xff] %vm160_vm2, %v133_v18 }
  0xe0   :  { %248 = vrot.lane.b32.xlu0 %v246_v19, %s2101_s28  ;;  %v1843_v22 = vpop.f32.mrb[3].mxu1 }
  0xe1   :  { %v1834_v3 = vpop.f32.mrb[4].mxu0 }
  0xe2   :  { %v154_v4 = vadd.f32 %v1834_v3, %v2212_v8  ;;  %v145_v6 = vpop.f32.mrb[5].mxu0 }
  0xe3   :  { %v146_v9 = vadd.f32 %v2212_v8, %v145_v6  ;;  %v1835_v10 = vpop.f32.mrb[6].mxu0  ;;  %v407_v20 = vld [vmem:[#allocation2 + $0x10] sm:$0xff] }
  0xe4   :  { %v235_v23 = vld [vmem:[#allocation2] sm:$0xff]  ;;  %167 = vst.msk [vmem:[#allocation2 + $0x30] sm:$0xff] %vm160_vm2, %v154_v4  ;;  %v157_v11 = vadd.f32 %v1835_v10, %v2212_v8  ;;  %v148_v12 = vpop.f32.mrb[7].mxu0 }
  0xe5   :  { %v236_v24 = vadd.f32 %v235_v23, %v229_v17  ;;  %165 = vst.msk [vmem:[#allocation2 + $0x20] sm:$0xff] %vm160_vm2, %v146_v9  ;;  %v149_v14 = vadd.f32 %v2212_v8, %v148_v12 }
  0xe6   :  { %v322_v46 = vld [vmem:[#allocation2 + $0x8] sm:$0xff]  ;;  %168 = vst.msk [vmem:[#allocation2 + $0x38] sm:$0xff] %vm160_vm2, %v157_v11 }
  0xe7   :  { %v1720_v25 = vmul.f32 -1.442695, %v236_v24  ;;  %166 = vst.msk [vmem:[#allocation2 + $0x28] sm:$0xff] %vm160_vm2, %v149_v14 }
  0xe9   :  { %2003 = vpow2.f32 %v1720_v25 }
  0xec   :  { %v577_v9 = vld [vmem:[#allocation2 + $0x20] sm:$0xff] }
  0xf3   :  { %v2004_v26 = vpop.eup %2003 }
  0xf4   :  { %v240_v27 = vadd.f32 1.0, %v2004_v26 }
  0xf6   :  { %2005 = vrcp.f32 %v240_v27 }
 0x100   :  { %v2006_v28 = vpop.eup %2005 }
 0x152   :  { %v249_v29 = vpop.permute.xlu0 %248 }
 0x153   :  { %v251_v30 = vmul.f32 %v2006_v28, %v249_v29 }
 0x155   :  { %253 = vrot.lane.b32.xlu1 %v251_v30, %s2101_s28 }
 0x1c7   :  { %v254_v31 = vpop.permute.xlu1 %253 }
 0x1c8   :  { %v256_v32 = vadd.f32 %v254_v31, %v235_v23 }
 0x1ca   :  { %2007 = vtanh.f32 %v256_v32 }
 0x1d4   :  { %v2008_v33 = vpop.eup %2007 }
 0x1d5   :  { %v258_v34 = vsub.f32 0.0, %v2008_v33 }
 0x1d7   :  { %260 = vrot.lane.b32.xlu1 %v258_v34, %s2103_s3 }
 0x249   :  { %v261_v35 = vpop.permute.xlu1 %260 }
 0x24a   :  { %v263_v36 = vmul.f32 %v2006_v28, %v261_v35 }
 0x24c   :  { %265 = vrot.lane.b32.xlu0 %v263_v36, %s2104_s29 }
 0x2be   :  { %v266_v37 = vpop.permute.xlu0 %265 }
 0x2bf   :  { %v2229_v38 = vadd.f32 %v2008_v33, %v266_v37 }
 0x2c1   :  { %v274_v39 = vpack.c.bf16 %v2229_v38, %v2229_v38 }
 0x2c3   :  { %276 = vrot.lane.b32.xlu1 %v274_v39, %s2101_s28 }
 0x335   :  { %v277_v40 = vpop.permute.xlu1 %276 }
 0x336   :  { %1849 = vmatmul.mubr.msk.bf16.vlgmr.msra.gmra.mrb[4].mxu1 %vm191_vm3, %v277_v40 }
 0x337   :  { %1861 = vmatpush3.bf16.msra.mxu1 %v2174_v2  ;;  %1864 = vmatprep.mubr.msk.bf16.mxu1 %vm2100_vm0, %v2099_v0 }
 0x338   :  { %1862 = vmatprep.subr.bf16.mxu1 %v2099_v0 }
 0x33b   :  { %1863 = vmatpush3.bf16.msra.mxu1 %v2188_v5 }
 0x33c   :  { %1876 = vmatprep.subr.bf16.mxu1 %v2099_v0 }
 0x409   :  { %v315_v41 = vpop.f32.mrb[4].mxu1 }
 0x40a   :  { %v330_v42 = vadd.f32 %v315_v41, %v2216_v13  ;;  %v1850_v43 = vpop.f32.mrb[5].mxu1  ;;  %v323_v47 = vadd.f32 %v322_v46, %v315_v41 }
 0x40b   :  { %v318_v44 = vpop.f32.mrb[6].mxu1 }
 0x40c   :  { %332 = vrot.lane.b32.xlu0 %v330_v42, %s2101_s28  ;;  %v1851_v45 = vpop.f32.mrb[7].mxu1  ;;  %v1722_v48 = vmul.f32 -1.442695, %v323_v47  ;;  %v492_v44 = vld [vmem:[#allocation2 + $0x18] sm:$0xff] }
 0x40e   :  { %2009 = vpow2.f32 %v1722_v48 }
 0x418   :  { %v2010_v49 = vpop.eup %2009 }
 0x419   :  { %v327_v50 = vadd.f32 1.0, %v2010_v49 }
 0x41b   :  { %2011 = vrcp.f32 %v327_v50 }
 0x425   :  { %v2012_v51 = vpop.eup %2011 }
 0x47e   :  { %v333_v52 = vpop.permute.xlu0 %332 }
 0x47f   :  { %v335_v53 = vmul.f32 %v2012_v51, %v333_v52 }
 0x481   :  { %337 = vrot.lane.b32.xlu1 %v335_v53, %s2101_s28 }
 0x4f3   :  { %v338_v54 = vpop.permute.xlu1 %337 }
 0x4f4   :  { %v340_v55 = vadd.f32 %v338_v54, %v322_v46 }
 0x4f6   :  { %2013 = vtanh.f32 %v340_v55 }
 0x500   :  { %v2014_v56 = vpop.eup %2013 }
 0x501   :  { %v342_v57 = vsub.f32 %v2229_v38, %v2014_v56 }
 0x503   :  { %344 = vrot.lane.b32.xlu0 %v342_v57, %s2103_s3 }
 0x575   :  { %v345_v60 = vpop.permute.xlu0 %344 }
 0x576   :  { %v347_v61 = vmul.f32 %v2012_v51, %v345_v60 }
 0x578   :  { %349 = vrot.lane.b32.xlu1 %v347_v61, %s2104_s29 }
 0x5ea   :  { %v350_v62 = vpop.permute.xlu1 %349 }
 0x5eb   :  { %v2257_v63 = vadd.f32 %v2014_v56, %v350_v62 }
 0x5ed   :  { %v359_v1 = vpack.c.bf16 %v2257_v63, %v2257_v63 }
 0x5ef   :  { %361 = vrot.lane.b32.xlu0 %v359_v1, %s2101_s28 }
 0x661   :  { %v362_v15 = vpop.permute.xlu0 %361 }
 0x662   :  { %1857 = vmatmul.mubr.msk.bf16.vlgmr.msra.gmra.mrb[8].mxu0 %vm191_vm3, %v362_v15 }
 0x663   :  { %1869 = vmatpush3.bf16.msra.mxu0 %v2174_v2  ;;  %1872 = vmatprep.mubr.msk.bf16.mxu0 %vm2100_vm0, %v2099_v0 }
 0x664   :  { %1870 = vmatprep.subr.bf16.mxu0 %v2099_v0 }
 0x667   :  { %1871 = vmatpush3.bf16.msra.mxu0 %v2188_v5 }
 0x668   :  { %1884 = vmatprep.subr.bf16.mxu0 %v2099_v0 }
 0x735   :  { %v400_v16 = vpop.f32.mrb[8].mxu0 }
 0x736   :  { %v415_v8 = vadd.f32 %v400_v16, %v2216_v13  ;;  %v1858_v17 = vpop.f32.mrb[9].mxu0  ;;  %v408_v21 = vadd.f32 %v407_v20, %v400_v16 }
 0x737   :  { %v403_v18 = vpop.f32.mrb[10].mxu0 }
 0x738   :  { %417 = vrot.lane.b32.xlu1 %v415_v8, %s2101_s28  ;;  %v1859_v19 = vpop.f32.mrb[11].mxu0  ;;  %v1724_v22 = vmul.f32 -1.442695, %v408_v21 }
 0x73a   :  { %2015 = vpow2.f32 %v1724_v22 }
 0x744   :  { %v2016_v23 = vpop.eup %2015 }
 0x745   :  { %v412_v24 = vadd.f32 1.0, %v2016_v23 }
 0x747   :  { %2017 = vrcp.f32 %v412_v24 }
 0x751   :  { %v2018_v25 = vpop.eup %2017 }
 0x7aa   :  { %v418_v26 = vpop.permute.xlu1 %417 }
 0x7ab   :  { %v420_v27 = vmul.f32 %v2018_v25, %v418_v26 }
 0x7ad   :  { %422 = vrot.lane.b32.xlu0 %v420_v27, %s2101_s28 }
 0x81f   :  { %v423_v28 = vpop.permute.xlu0 %422 }
 0x820   :  { %v425_v29 = vadd.f32 %v423_v28, %v407_v20 }
 0x822   :  { %2019 = vtanh.f32 %v425_v29 }
 0x82c   :  { %v2020_v30 = vpop.eup %2019 }
 0x82d   :  { %v427_v31 = vsub.f32 %v2257_v63, %v2020_v30 }
 0x82f   :  { %429 = vrot.lane.b32.xlu1 %v427_v31, %s2103_s3 }
 0x8a1   :  { %v430_v32 = vpop.permute.xlu1 %429 }
 0x8a2   :  { %v432_v33 = vmul.f32 %v2018_v25, %v430_v32  ;;  %v662_v32 = vld [vmem:[#allocation2 + $0x28] sm:$0xff] }
 0x8a4   :  { %434 = vrot.lane.b32.xlu0 %v432_v33, %s2104_s29 }
 0x916   :  { %v435_v34 = vpop.permute.xlu0 %434 }
 0x917   :  { %v2283_v35 = vadd.f32 %v2020_v30, %v435_v34 }
 0x919   :  { %v444_v36 = vpack.c.bf16 %v2283_v35, %v2283_v35 }
 0x91b   :  { %446 = vrot.lane.b32.xlu1 %v444_v36, %s2101_s28 }
 0x98d   :  { %v447_v37 = vpop.permute.xlu1 %446 }
 0x98e   :  { %1865 = vmatmul.mubr.msk.bf16.vlgmr.msra.gmra.mrb[8].mxu1 %vm191_vm3, %v447_v37 }
 0x98f   :  { %1877 = vmatpush3.bf16.msra.mxu1 %v2174_v2  ;;  %1880 = vmatprep.mubr.msk.bf16.mxu1 %vm2100_vm0, %v2099_v0 }
 0x990   :  { %1878 = vmatprep.subr.bf16.mxu1 %v2099_v0 }
 0x993   :  { %1879 = vmatpush3.bf16.msra.mxu1 %v2188_v5 }
 0x994   :  { %1892 = vmatprep.subr.bf16.mxu1 %v2099_v0 }
 0xa61   :  { %v485_v39 = vpop.f32.mrb[8].mxu1 }
 0xa62   :  { %v500_v40 = vadd.f32 %v485_v39, %v2216_v13  ;;  %v1866_v41 = vpop.f32.mrb[9].mxu1  ;;  %v493_v45 = vadd.f32 %v492_v44, %v485_v39 }
 0xa63   :  { %v488_v42 = vpop.f32.mrb[10].mxu1 }
 0xa64   :  { %502 = vrot.lane.b32.xlu0 %v500_v40, %s2101_s28  ;;  %v1867_v43 = vpop.f32.mrb[11].mxu1  ;;  %v1726_v46 = vmul.f32 -1.442695, %v493_v45 }
 0xa66   :  { %2021 = vpow2.f32 %v1726_v46 }
 0xa70   :  { %v2022_v47 = vpop.eup %2021 }
 0xa71   :  { %v497_v48 = vadd.f32 1.0, %v2022_v47 }
 0xa73   :  { %2023 = vrcp.f32 %v497_v48 }
 0xa7d   :  { %v2024_v49 = vpop.eup %2023 }
 0xad6   :  { %v503_v50 = vpop.permute.xlu0 %502 }
 0xad7   :  { %v505_v51 = vmul.f32 %v2024_v49, %v503_v50 }
 0xad9   :  { %507 = vrot.lane.b32.xlu1 %v505_v51, %s2101_s28 }
 0xb4b   :  { %v508_v52 = vpop.permute.xlu1 %507 }
 0xb4c   :  { %v510_v53 = vadd.f32 %v508_v52, %v492_v44 }
 0xb4e   :  { %2025 = vtanh.f32 %v510_v53 }
 0xb58   :  { %v2026_v54 = vpop.eup %2025 }
 0xb59   :  { %v512_v55 = vsub.f32 %v2283_v35, %v2026_v54 }
 0xb5b   :  { %514 = vrot.lane.b32.xlu0 %v512_v55, %s2103_s3  ;;  %v747_v55 = vld [vmem:[#allocation2 + $0x30] sm:$0xff] }
 0xbcd   :  { %v515_v56 = vpop.permute.xlu0 %514 }
 0xbce   :  { %v517_v57 = vmul.f32 %v2024_v49, %v515_v56 }
 0xbd0   :  { %519 = vrot.lane.b32.xlu1 %v517_v57, %s2104_s29 }
 0xc42   :  { %v520_v58 = vpop.permute.xlu1 %519 }
 0xc43   :  { %v2301_v59 = vadd.f32 %v2026_v54, %v520_v58 }
 0xc45   :  { %v529_v60 = vpack.c.bf16 %v2301_v59, %v2301_v59 }
 0xc47   :  { %531 = vrot.lane.b32.xlu0 %v529_v60, %s2101_s28 }
 0xcb9   :  { %v532_v61 = vpop.permute.xlu0 %531 }
 0xcba   :  { %1873 = vmatmul.mubr.msk.bf16.vlgmr.msra.gmra.mrb[12].mxu0 %vm191_vm3, %v532_v61 }
 0xcbb   :  { %1885 = vmatpush3.bf16.msra.mxu0 %v2174_v2  ;;  %1888 = vmatprep.mubr.msk.bf16.mxu0 %vm2100_vm0, %v2099_v0 }
 0xcbc   :  { %1886 = vmatprep.subr.bf16.mxu0 %v2099_v0 }
 0xcbf   :  { %1887 = vmatpush3.bf16.msra.mxu0 %v2188_v5 }
 0xd8d   :  { %v570_v62 = vpop.f32.mrb[12].mxu0 }
 0xd8e   :  { %v585_v1 = vadd.f32 %v570_v62, %v2216_v13  ;;  %v1874_v3 = vpop.f32.mrb[13].mxu0  ;;  %v578_v10 = vadd.f32 %v577_v9, %v570_v62 }
 0xd8f   :  { %v573_v4 = vpop.f32.mrb[14].mxu0 }
 0xd90   :  { %587 = vrot.lane.b32.xlu1 %v585_v1, %s2101_s28  ;;  %v1875_v6 = vpop.f32.mrb[15].mxu0  ;;  %v1728_v11 = vmul.f32 -1.442695, %v578_v10 }
 0xd92   :  { %2027 = vpow2.f32 %v1728_v11 }
 0xd9c   :  { %v2028_v12 = vpop.eup %2027 }
 0xd9d   :  { %v582_v14 = vadd.f32 1.0, %v2028_v12 }
 0xd9f   :  { %2029 = vrcp.f32 %v582_v14  ;;  %v1999_v14 = vld [vmem:[%s2556_s5] sm:$0xff]  }
 0xda0   :  { %1900 = vmatprep.subr.bf16.mxu0 %v1999_v14 }
 0xda9   :  { %v2030_v15 = vpop.eup %2029 }
 0xe02   :  { %v588_v16 = vpop.permute.xlu1 %587 }
 0xe03   :  { %v590_v8 = vmul.f32 %v2030_v15, %v588_v16  ;;  %v2000_v16 = vld [vmem:[%s2556_s5 + $0x8] sm:$0xff]  }
 0xe05   :  { %592 = vrot.lane.b32.xlu0 %v590_v8, %s2101_s28 }
 0xe77   :  { %v593_v17 = vpop.permute.xlu0 %592 }
 0xe78   :  { %v595_v18 = vadd.f32 %v593_v17, %v577_v9  ;;  %v1742_v17 = vld [vmem:[%s2557_s8] ss:$0 sm:$0xff] }
 0xe7a   :  { %2031 = vtanh.f32 %v595_v18  ;;  %v2377_v18 = vld [vmem:[%s2555_s6] sm:$0xff]  }
 0xe84   :  { %v2032_v19 = vpop.eup %2031 }
 0xe85   :  { %v597_v20 = vsub.f32 %v2301_v59, %v2032_v19 }
 0xe87   :  { %599 = vrot.lane.b32.xlu1 %v597_v20, %s2103_s3 }
 0xef9   :  { %v600_v21 = vpop.permute.xlu1 %599 }
 0xefa   :  { %v602_v22 = vmul.f32 %v2030_v15, %v600_v21 }
 0xefc   :  { %604 = vrot.lane.b32.xlu0 %v602_v22, %s2104_s29 }
 0xf6e   :  { %v605_v23 = vpop.permute.xlu0 %604 }
 0xf6f   :  { %v2318_v24 = vadd.f32 %v2032_v19, %v605_v23 }
 0xf71   :  { %v614_v25 = vpack.c.bf16 %v2318_v24, %v2318_v24 }
 0xf73   :  { %616 = vrot.lane.b32.xlu1 %v614_v25, %s2101_s28 }
 0xfe5   :  { %v617_v26 = vpop.permute.xlu1 %616 }
 0xfe6   :  { %1881 = vmatmul.mubr.msk.bf16.vlgmr.msra.gmra.mrb[12].mxu1 %vm191_vm3, %v617_v26 }
 0xfe7   :  { %1893 = vmatpush3.bf16.msra.mxu1 %v2174_v2  ;;  %1896 = vmatprep.mubr.msk.bf16.mxu1 %vm2100_vm0, %v2099_v0 }
 0xfe8   :  { %1894 = vmatprep.subr.bf16.mxu1 %v2099_v0 }
 0xfeb   :  { %1895 = vmatpush3.bf16.msra.mxu1 %v2188_v5 }
 0xfec   :  { %1912 = vmatprep.subr.bf16.mxu1 %v2099_v0 }
0x10b9   :  { %v655_v27 = vpop.f32.mrb[12].mxu1 }
0x10ba   :  { %v670_v28 = vadd.f32 %v655_v27, %v2216_v13  ;;  %v1882_v29 = vpop.f32.mrb[13].mxu1  ;;  %v663_v33 = vadd.f32 %v662_v32, %v655_v27 }
0x10bb   :  { %v658_v30 = vpop.f32.mrb[14].mxu1 }
0x10bc   :  { %672 = vrot.lane.b32.xlu0 %v670_v28, %s2101_s28  ;;  %v1883_v31 = vpop.f32.mrb[15].mxu1  ;;  %v1730_v2 = vmul.f32 -1.442695, %v663_v33 }
0x10be   :  { %2033 = vpow2.f32 %v1730_v2 }
0x10c8   :  { %v2034_v34 = vpop.eup %2033 }
0x10c9   :  { %v667_v36 = vadd.f32 1.0, %v2034_v34 }
0x10cb   :  { %2035 = vrcp.f32 %v667_v36 }
0x10d5   :  { %v2036_v37 = vpop.eup %2035 }
0x112e   :  { %v673_v39 = vpop.permute.xlu0 %672 }
0x112f   :  { %v675_v5 = vmul.f32 %v2036_v37, %v673_v39 }
0x1131   :  { %677 = vrot.lane.b32.xlu1 %v675_v5, %s2101_s28 }
0x11a3   :  { %v678_v40 = vpop.permute.xlu1 %677 }
0x11a4   :  { %v680_v41 = vadd.f32 %v678_v40, %v662_v32 }
0x11a6   :  { %2037 = vtanh.f32 %v680_v41 }
0x11b0   :  { %v2038_v42 = vpop.eup %2037 }
0x11b1   :  { %v682_v43 = vsub.f32 %v2318_v24, %v2038_v42 }
0x11b3   :  { %684 = vrot.lane.b32.xlu0 %v682_v43, %s2103_s3 }
0x1225   :  { %v685_v44 = vpop.permute.xlu0 %684 }
0x1226   :  { %v687_v45 = vmul.f32 %v2036_v37, %v685_v44  ;;  %v2413_v37 = vld [vmem:[%s2558_s7] ss:$0 sm:$0xff] }
0x1228   :  { %689 = vrot.lane.b32.xlu1 %v687_v45, %s2104_s29 }
0x129a   :  { %v690_v46 = vpop.permute.xlu1 %689 }
0x129b   :  { %v2336_v47 = vadd.f32 %v2038_v42, %v690_v46 }
0x129d   :  { %v699_v48 = vpack.c.bf16 %v2336_v47, %v2336_v47 }
0x129f   :  { %701 = vrot.lane.b32.xlu0 %v699_v48, %s2101_s28 }
0x1311   :  { %v702_v49 = vpop.permute.xlu0 %701 }
0x1312   :  { %1889 = vmatmul.mubr.msk.bf16.vlgmr.msra.gmra.mrb[16].mxu0 %vm191_vm3, %v702_v49 }
0x1313   :  { %1901 = vmatpush3.bf16.msra.mxu0 %v1999_v14 }
0x1314   :  { %1902 = vmatprep.subr.bf16.mxu0 %v2000_v16 }
0x1317   :  { %1903 = vmatpush3.bf16.msra.mxu0 %v2000_v16 }
0x1318   :  { %1928 = vmatprep.subr.bf16.mxu0 %v2099_v0 }
0x13e5   :  { %v740_v50 = vpop.f32.mrb[16].mxu0 }
0x13e6   :  { %v755_v51 = vadd.f32 %v740_v50, %v2216_v13  ;;  %v1890_v52 = vpop.f32.mrb[17].mxu0  ;;  %v748_v56 = vadd.f32 %v747_v55, %v740_v50 }
0x13e7   :  { %v743_v53 = vpop.f32.mrb[18].mxu0 }
0x13e8   :  { %757 = vrot.lane.b32.xlu1 %v755_v51, %s2101_s28  ;;  %v1891_v54 = vpop.f32.mrb[19].mxu0  ;;  %v1732_v57 = vmul.f32 -1.442695, %v748_v56 }
0x13ea   :  { %2039 = vpow2.f32 %v1732_v57 }
0x13f4   :  { %v2040_v58 = vpop.eup %2039 }
0x13f5   :  { %v752_v60 = vadd.f32 1.0, %v2040_v58 }
0x13f7   :  { %2041 = vrcp.f32 %v752_v60 }
0x1401   :  { %v2042_v61 = vpop.eup %2041 }
0x145a   :  { %v758_v62 = vpop.permute.xlu1 %757 }
0x145b   :  { %v760_v1 = vmul.f32 %v2042_v61, %v758_v62 }
0x145d   :  { %762 = vrot.lane.b32.xlu0 %v760_v1, %s2101_s28  ;;  %v832_v1 = vld [vmem:[#allocation2 + $0x38] sm:$0xff] }
0x14cf   :  { %v763_v3 = vpop.permute.xlu0 %762 }
0x14d0   :  { %v765_v4 = vadd.f32 %v763_v3, %v747_v55 }
0x14d2   :  { %2043 = vtanh.f32 %v765_v4 }
0x14dc   :  { %v2044_v6 = vpop.eup %2043 }
0x14dd   :  { %v767_v9 = vsub.f32 %v2336_v47, %v2044_v6 }
0x14df   :  { %769 = vrot.lane.b32.xlu1 %v767_v9, %s2103_s3 }
0x1551   :  { %v770_v10 = vpop.permute.xlu1 %769 }
0x1552   :  { %v772_v11 = vmul.f32 %v2042_v61, %v770_v10 }
0x1554   :  { %774 = vrot.lane.b32.xlu0 %v772_v11, %s2104_s29 }
0x1558   :  { %270 = vrot.lane.b32.xlu0 %v2229_v38, %s2101_s28 }
0x155c   :  { %439 = vrot.lane.b32.xlu0 %v2283_v35, %s2101_s28 }
0x1560   :  { %1059 = vrot.lane.b32.xlu0 %v1742_v17, %s2101_s28 }
0x15c6   :  { %v775_v12 = vpop.permute.xlu0 %774 }
0x15c7   :  { %v2355_v15 = vadd.f32 %v2044_v6, %v775_v12 }
0x15c9   :  { %v784_v8 = vpack.c.bf16 %v2355_v15, %v2355_v15 }
0x15ca   :  { %v271_v38 = vpop.permute.xlu0 %270 }
0x15cb   :  { %273 = vst.msk [vmem:[#allocation3] sm:$0xff] %vm191_vm3, %v271_v38  ;;  %786 = vrot.lane.b32.xlu1 %v784_v8, %s2101_s28 }
0x15ce   :  { %v440_v35 = vpop.permute.xlu0 %439 }
0x15cf   :  { %443 = vst.msk [vmem:[#allocation3 + $0x10] sm:$0xff] %vm191_vm3, %v440_v35  ;;  %354 = vrot.lane.b32.xlu1 %v2257_v63, %s2101_s28  ;;  %v2384_v63 = vld [vmem:[%s2555_s6 + $0x8] sm:$0xff]  }
0x15d2   :  { %v869_v21 = vld [vmem:[#allocation3] sm:$0xff]  ;;  %v2406_v31 = vpop.permute.xlu0 %1059 }
0x15d3   :  { %524 = vrot.lane.b32.xlu1 %v2301_v59, %s2101_s28 }
0x15d6   :  { %v871_v25 = vld [vmem:[#allocation3 + $0x10] sm:$0xff] }
0x163d   :  { %v787_v19 = vpop.permute.xlu1 %786 }
0x163e   :  { %1897 = vmatmul.mubr.msk.bf16.vlgmr.msra.gmra.mrb[16].mxu1 %vm191_vm3, %v787_v19 }
0x163f   :  { %1913 = vmatpush3.bf16.msra.mxu1 %v2377_v18  ;;  %1916 = vmatprep.mubr.msk.bf16.mxu1 %vm2100_vm0, %v2099_v0 }
0x1640   :  { %1914 = vmatprep.subr.bf16.mxu1 %v2099_v0 }
0x1641   :  { %v355_v59 = vpop.permute.xlu1 %354 }
0x1642   :  { %358 = vst.msk [vmem:[#allocation3 + $0x8] sm:$0xff] %vm191_vm3, %v355_v59 }
0x1643   :  { %1915 = vmatpush3.bf16.msra.mxu1 %v2384_v63 }
0x1644   :  { %1920 = vmatprep.subr.bf16.mxu1 %v2099_v0 }
0x1645   :  { %v525_v20 = vpop.permute.xlu1 %524 }
0x1646   :  { %528 = vst.msk [vmem:[#allocation3 + $0x18] sm:$0xff] %vm191_vm3, %v525_v20  ;;  %1917 = vmatmul.mubr.bf16.vlgmr.msra.gmra.mrb[20].mxu1 %v2102_v7 }
0x1647   :  { %1921 = vmatpush3.bf16.msra.mxu1 %v2377_v18  ;;  %1924 = vmatprep.mubr.msk.bf16.mxu1 %vm2100_vm0, %v2099_v0 }
0x1648   :  { %1922 = vmatprep.subr.bf16.mxu1 %v2099_v0 }
0x1649   :  { %v870_v22 = vld [vmem:[#allocation3 + $0x8] sm:$0xff] }
0x164a   :  { %v877_v23 = vpack.c.bf16 %v870_v22, %v869_v21 }
0x164b   :  { %1923 = vmatpush3.bf16.msra.mxu1 %v2384_v63 }
0x164c   :  { %1904 = vmatprep.mubr.msk.bf16.mxu0 %vm191_vm3, %v877_v23  ;;  %1936 = vmatprep.subr.bf16.mxu1 %v2099_v0 }
0x164d   :  { %v872_v26 = vld [vmem:[#allocation3 + $0x18] sm:$0xff] }
0x164e   :  { %v878_v27 = vpack.c.bf16 %v872_v26, %v871_v25 }
0x1650   :  { %1905 = vmatmul.mubr.msk.bf16.vlgmr.msra.gmra.mrb[20].mxu0 %vm191_vm3, %v878_v27 }
0x1651   :  { %1929 = vmatpush3.bf16.msra.mxu0 %v2377_v18 }
0x1652   :  { %1930 = vmatprep.subr.bf16.mxu0 %v2099_v0 }
0x1655   :  { %1931 = vmatpush3.bf16.msra.mxu0 %v2384_v63 }
0x1656   :  { %1944 = vmatprep.subr.bf16.mxu0 %v2099_v0 }
0x1711   :  { %v825_v7 = vpop.f32.mrb[16].mxu1 }
0x1712   :  { %v1898_v28 = vpop.f32.mrb[17].mxu1  ;;  %v840_v62 = vadd.f32 %v825_v7, %v2216_v13  ;;  %v833_v3 = vadd.f32 %v832_v1, %v825_v7 }
0x1713   :  { %v828_v29 = vpop.f32.mrb[18].mxu1 }
0x1714   :  { %v1899_v30 = vpop.f32.mrb[19].mxu1  ;;  %v1734_v4 = vmul.f32 -1.442695, %v833_v3 }
0x1719   :  { %v1045_v32 = vpop.f32.mrb[20].mxu1 }
0x171a   :  { %v1062_v33 = vadd.f32 %v2406_v31, %v1045_v32  ;;  %v1918_v2 = vpop.f32.mrb[21].mxu1 }
0x171b   :  { %v1048_v34 = vpop.f32.mrb[22].mxu1 }
0x171c   :  { %1064 = vrot.lane.b32.xlu1 %v1062_v33, %s2101_s28  ;;  %v1919_v36 = vpop.f32.mrb[23].mxu1 }
0x1723   :  { %v1906_v39 = vpop.f32.mrb[20].mxu0 }
0x1724   :  { %v959_v5 = vadd.f32 %v1906_v39, %v2413_v37  ;;  %v950_v40 = vpop.f32.mrb[21].mxu0 }
0x1725   :  { %v951_v41 = vadd.f32 %v2413_v37, %v950_v40  ;;  %v1907_v42 = vpop.f32.mrb[22].mxu0 }
0x1726   :  { %983 = vst.msk [vmem:[#allocation2 + $0x10] sm:$0xff] %vm160_vm2, %v959_v5  ;;  %v962_v43 = vadd.f32 %v1907_v42, %v2413_v37  ;;  %v953_v44 = vpop.f32.mrb[23].mxu0 }
0x1727   :  { %981 = vst.msk [vmem:[#allocation2] sm:$0xff] %vm160_vm2, %v951_v41  ;;  %v954_v45 = vadd.f32 %v2413_v37, %v953_v44 }
0x1728   :  { %984 = vst.msk [vmem:[#allocation2 + $0x18] sm:$0xff] %vm160_vm2, %v962_v43 }
0x1729   :  { %982 = vst.msk [vmem:[#allocation2 + $0x8] sm:$0xff] %vm160_vm2, %v954_v45 }
0x172e   :  { %v1051_v46 = vld [vmem:[#allocation2] sm:$0xff] }
0x172f   :  { %v1052_v48 = vadd.f32 %v1051_v46, %v1045_v32 }
0x1730   :  { %v1132_v29 = vld [vmem:[#allocation2 + $0x8] sm:$0xff] }
0x1731   :  { %v1745_v49 = vmul.f32 -1.442695, %v1052_v48 }
0x1733   :  { %2045 = vpow2.f32 %v1745_v49 }
0x173d   :  { %v2046_v50 = vpop.eup %2045 }
0x173e   :  { %v1056_v51 = vadd.f32 1.0, %v2046_v50 }
0x1740   :  { %2047 = vrcp.f32 %v1056_v51 }
0x174a   :  { %v2048_v52 = vpop.eup %2047 }
0x178e   :  { %v1065_v53 = vpop.permute.xlu1 %1064 }
0x178f   :  { %v1067_v54 = vmul.f32 %v2048_v52, %v1065_v53 }
0x1791   :  { %1069 = vrot.lane.b32.xlu0 %v1067_v54, %s2101_s28 }
0x1803   :  { %v1070_v55 = vpop.permute.xlu0 %1069 }
0x1804   :  { %v1072_v56 = vadd.f32 %v1070_v55, %v1051_v46 }
0x1806   :  { %2049 = vtanh.f32 %v1072_v56 }
0x1807   :  { %2051 = vpow2.f32 %v1734_v4 }
0x1810   :  { %v2050_v57 = vpop.eup %2049 }
0x1811   :  { %v1074_v58 = vsub.f32 0.0, %v2050_v57  ;;  %v2052_v6 = vpop.eup %2051 }
0x1812   :  { %v837_v9 = vadd.f32 1.0, %v2052_v6 }
0x1813   :  { %1076 = vrot.lane.b32.xlu1 %v1074_v58, %s2103_s3 }
0x1814   :  { %2053 = vrcp.f32 %v837_v9 }
0x181e   :  { %v2054_v14 = vpop.eup %2053 }
0x1885   :  { %v1077_v60 = vpop.permute.xlu1 %1076 }
0x1886   :  { %v1079_v61 = vmul.f32 %v2048_v52, %v1077_v60 }
0x1888   :  { %1081 = vrot.lane.b32.xlu0 %v1079_v61, %s2104_s29 }
0x188c   :  { %842 = vrot.lane.b32.xlu0 %v840_v62, %s2101_s28 }
0x18fa   :  { %v1082_v10 = vpop.permute.xlu0 %1081 }
0x18fb   :  { %v1084_v11 = vadd.f32 %v2050_v57, %v1082_v10 }
0x18fd   :  { %v1085_v12 = vpack.c.bf16 %v1084_v11, %v1084_v11 }
0x18fe   :  { %v843_v16 = vpop.permute.xlu0 %842 }
0x18ff   :  { %v845_v8 = vmul.f32 %v2054_v14, %v843_v16  ;;  %1087 = vrot.lane.b32.xlu1 %v1085_v12, %s2101_s28  ;;  %v1210_v12 = vld [vmem:[#allocation2 + $0x10] sm:$0xff] }
0x1901   :  { %847 = vrot.lane.b32.xlu0 %v845_v8, %s2101_s28 }
0x1971   :  { %v1088_v13 = vpop.permute.xlu1 %1087 }
0x1972   :  { %1925 = vmatmul.mubr.msk.bf16.vlgmr.msra.gmra.mrb[24].mxu1 %vm191_vm3, %v1088_v13 }
0x1973   :  { %v848_v38 = vpop.permute.xlu0 %847  ;;  %1937 = vmatpush3.bf16.msra.mxu1 %v2377_v18  ;;  %1940 = vmatprep.mubr.msk.bf16.mxu1 %vm2100_vm0, %v2099_v0 }
0x1974   :  { %v850_v35 = vadd.f32 %v848_v38, %v832_v1  ;;  %1938 = vmatprep.subr.bf16.mxu1 %v2099_v0 }
0x1976   :  { %2055 = vtanh.f32 %v850_v35 }
0x1977   :  { %1939 = vmatpush3.bf16.msra.mxu1 %v2384_v63 }
0x1978   :  { %1952 = vmatprep.subr.bf16.mxu1 %v2099_v0 }
0x1980   :  { %v2056_v17 = vpop.eup %2055 }
0x1981   :  { %v852_v19 = vsub.f32 %v2355_v15, %v2056_v17 }
0x1983   :  { %854 = vrot.lane.b32.xlu0 %v852_v19, %s2103_s3 }
0x19f5   :  { %v855_v59 = vpop.permute.xlu0 %854 }
0x19f6   :  { %v857_v20 = vmul.f32 %v2054_v14, %v855_v59 }
0x19f8   :  { %859 = vrot.lane.b32.xlu0 %v857_v20, %s2104_s29 }
0x19fc   :  { %609 = vrot.lane.b32.xlu0 %v2318_v24, %s2101_s28 }
0x1a00   :  { %779 = vrot.lane.b32.xlu0 %v2355_v15, %s2101_s28 }
0x1a45   :  { %v1126_v21 = vpop.f32.mrb[24].mxu1 }
0x1a46   :  { %v1140_v22 = vadd.f32 %v1126_v21, %v2406_v31  ;;  %v1926_v23 = vpop.f32.mrb[25].mxu1  ;;  %v1133_v24 = vadd.f32 %v1132_v29, %v1126_v21 }
0x1a47   :  { %v1129_v25 = vpop.f32.mrb[26].mxu1 }
0x1a48   :  { %1142 = vrot.lane.b32.xlu1 %v1140_v22, %s2101_s28  ;;  %v1927_v26 = vpop.f32.mrb[27].mxu1  ;;  %v1747_v30 = vmul.f32 -1.442695, %v1133_v24 }
0x1a4a   :  { %2057 = vpow2.f32 %v1747_v30 }
0x1a54   :  { %v2058_v15 = vpop.eup %2057 }
0x1a55   :  { %v1137_v32 = vadd.f32 1.0, %v2058_v15  ;;  %v1288_v15 = vld [vmem:[#allocation2 + $0x18] sm:$0xff] }
0x1a57   :  { %2059 = vrcp.f32 %v1137_v32 }
0x1a61   :  { %v2060_v33 = vpop.eup %2059 }
0x1a6a   :  { %v860_v27 = vpop.permute.xlu0 %859 }
0x1a6b   :  { %v862_v43 = vadd.f32 %v2056_v17, %v860_v27 }
0x1a6e   :  { %v610_v7 = vpop.permute.xlu0 %609 }
0x1a6f   :  { %613 = vst.msk [vmem:[#allocation3 + $0x20] sm:$0xff] %vm191_vm3, %v610_v7 }
0x1a72   :  { %v780_v28 = vpop.permute.xlu0 %779 }
0x1a73   :  { %783 = vst.msk [vmem:[#allocation3 + $0x30] sm:$0xff] %vm191_vm3, %v780_v28 }
0x1a76   :  { %v873_v50 = vld [vmem:[#allocation3 + $0x20] sm:$0xff] }
0x1aba   :  { %v1143_v2 = vpop.permute.xlu1 %1142 }
0x1abb   :  { %v1145_v34 = vmul.f32 %v2060_v33, %v1143_v2 }
0x1abd   :  { %1147 = vrot.lane.b32.xlu1 %v1145_v34, %s2101_s28 }
0x1b2f   :  { %v1148_v36 = vpop.permute.xlu1 %1147 }
0x1b30   :  { %v1150_v39 = vadd.f32 %v1148_v36, %v1132_v29 }
0x1b32   :  { %2061 = vtanh.f32 %v1150_v39 }
0x1b3c   :  { %v2062_v5 = vpop.eup %2061 }
0x1b3d   :  { %v1152_v40 = vsub.f32 %v1084_v11, %v2062_v5 }
0x1b3f   :  { %1154 = vrot.lane.b32.xlu1 %v1152_v40, %s2103_s3 }
0x1bb1   :  { %v1155_v41 = vpop.permute.xlu1 %1154 }
0x1bb2   :  { %v1157_v42 = vmul.f32 %v2060_v33, %v1155_v41 }
0x1bb4   :  { %1159 = vrot.lane.b32.xlu1 %v1157_v42, %s2104_s29 }
0x1bb8   :  { %694 = vrot.lane.b32.xlu1 %v2336_v47, %s2101_s28  ;;  %v875_v47 = vld [vmem:[#allocation3 + $0x30] sm:$0xff] }
0x1bbc   :  { %864 = vrot.lane.b32.xlu1 %v862_v43, %s2101_s28 }
0x1c26   :  { %v1160_v44 = vpop.permute.xlu1 %1159 }
0x1c27   :  { %v1162_v45 = vadd.f32 %v2062_v5, %v1160_v44 }
0x1c29   :  { %v1163_v46 = vpack.c.bf16 %v1162_v45, %v1162_v45 }
0x1c2a   :  { %v695_v48 = vpop.permute.xlu1 %694 }
0x1c2b   :  { %698 = vst.msk [vmem:[#allocation3 + $0x28] sm:$0xff] %vm191_vm3, %v695_v48  ;;  %1165 = vrot.lane.b32.xlu0 %v1163_v46, %s2101_s28 }
0x1c2e   :  { %v865_v49 = vpop.permute.xlu1 %864 }
0x1c2f   :  { %868 = vst.msk [vmem:[#allocation3 + $0x38] sm:$0xff] %vm191_vm3, %v865_v49 }
0x1c32   :  { %v874_v51 = vld [vmem:[#allocation3 + $0x28] sm:$0xff] }
0x1c33   :  { %v879_v52 = vpack.c.bf16 %v874_v51, %v873_v50 }
0x1c35   :  { %1908 = vmatprep.mubr.msk.bf16.mxu0 %vm191_vm3, %v879_v52 }
0x1c36   :  { %v876_v53 = vld [vmem:[#allocation3 + $0x38] sm:$0xff] }
0x1c37   :  { %v880_v54 = vpack.c.bf16 %v876_v53, %v875_v47 }
0x1c39   :  { %1909 = vmatmul.mubr.msk.bf16.gmra.mrb[24].mxu0 %vm191_vm3, %v880_v54 }
0x1c3a   :  { %1932 = vmatprep.mubr.msk.bf16.mxu0 %vm2100_vm0, %v2099_v0 }
0x1c9d   :  { %v1166_v55 = vpop.permute.xlu0 %1165 }
0x1c9e   :  { %1933 = vmatmul.mubr.msk.bf16.vlgmr.msra.gmra.mrb[28].mxu0 %vm191_vm3, %v1166_v55 }
0x1c9f   :  { %1945 = vmatpush3.bf16.msra.mxu0 %v2377_v18  ;;  %1948 = vmatprep.mubr.msk.bf16.mxu0 %vm2100_vm0, %v2099_v0 }
0x1ca0   :  { %1946 = vmatprep.subr.bf16.mxu0 %v2099_v0 }
0x1ca3   :  { %1947 = vmatpush3.bf16.msra.mxu0 %v2384_v63 }
0x1ca4   :  { %1960 = vmatprep.subr.bf16.mxu0 %v2099_v0 }
0x1d0c   :  { %v1910_v56 = vpop.f32.mrb[24].mxu0 }
0x1d0d   :  { %v975_v57 = vadd.f32 %v1910_v56, %v2413_v37  ;;  %v966_v58 = vpop.f32.mrb[25].mxu0 }
0x1d0e   :  { %v967_v60 = vadd.f32 %v2413_v37, %v966_v58  ;;  %v1911_v61 = vpop.f32.mrb[26].mxu0 }
0x1d0f   :  { %987 = vst.msk [vmem:[#allocation2 + $0x30] sm:$0xff] %vm160_vm2, %v975_v57  ;;  %v978_v62 = vadd.f32 %v1911_v61, %v2413_v37  ;;  %v969_v1 = vpop.f32.mrb[27].mxu0 }
0x1d10   :  { %985 = vst.msk [vmem:[#allocation2 + $0x20] sm:$0xff] %vm160_vm2, %v967_v60  ;;  %v970_v3 = vadd.f32 %v2413_v37, %v969_v1 }
0x1d11   :  { %988 = vst.msk [vmem:[#allocation2 + $0x38] sm:$0xff] %vm160_vm2, %v978_v62 }
0x1d12   :  { %986 = vst.msk [vmem:[#allocation2 + $0x28] sm:$0xff] %vm160_vm2, %v970_v3 }
0x1d17   :  { %v1366_v55 = vld [vmem:[#allocation2 + $0x20] sm:$0xff] }
0x1d71   :  { %v1204_v4 = vpop.f32.mrb[28].mxu0 }
0x1d72   :  { %v1218_v6 = vadd.f32 %v1204_v4, %v2406_v31  ;;  %v1934_v9 = vpop.f32.mrb[29].mxu0  ;;  %v1211_v14 = vadd.f32 %v1210_v12, %v1204_v4 }
0x1d73   :  { %v1207_v10 = vpop.f32.mrb[30].mxu0 }
0x1d74   :  { %1220 = vrot.lane.b32.xlu1 %v1218_v6, %s2101_s28  ;;  %v1935_v11 = vpop.f32.mrb[31].mxu0  ;;  %v1749_v16 = vmul.f32 -1.442695, %v1211_v14 }
0x1d76   :  { %2063 = vpow2.f32 %v1749_v16 }
0x1d80   :  { %v2064_v8 = vpop.eup %2063 }
0x1d81   :  { %v1215_v13 = vadd.f32 1.0, %v2064_v8 }
0x1d83   :  { %2065 = vrcp.f32 %v1215_v13 }
0x1d8d   :  { %v2066_v37 = vpop.eup %2065 }
0x1de6   :  { %v1221_v38 = vpop.permute.xlu1 %1220 }
0x1de7   :  { %v1223_v35 = vmul.f32 %v2066_v37, %v1221_v38 }
0x1de9   :  { %1225 = vrot.lane.b32.xlu0 %v1223_v35, %s2101_s28 }
0x1e5b   :  { %v1226_v17 = vpop.permute.xlu0 %1225 }
0x1e5c   :  { %v1228_v19 = vadd.f32 %v1226_v17, %v1210_v12 }
0x1e5e   :  { %2067 = vtanh.f32 %v1228_v19  ;;  %v1444_v19 = vld [vmem:[#allocation2 + $0x28] sm:$0xff] }
0x1e68   :  { %v2068_v59 = vpop.eup %2067 }
0x1e69   :  { %v1230_v20 = vsub.f32 %v1162_v45, %v2068_v59 }
0x1e6b   :  { %1232 = vrot.lane.b32.xlu1 %v1230_v20, %s2103_s3 }
0x1edd   :  { %v1233_v21 = vpop.permute.xlu1 %1232 }
0x1ede   :  { %v1235_v22 = vmul.f32 %v2066_v37, %v1233_v21 }
0x1ee0   :  { %1237 = vrot.lane.b32.xlu0 %v1235_v22, %s2104_s29 }
0x1f52   :  { %v1238_v23 = vpop.permute.xlu0 %1237 }
0x1f53   :  { %v1240_v25 = vadd.f32 %v2068_v59, %v1238_v23 }
0x1f55   :  { %v1241_v26 = vpack.c.bf16 %v1240_v25, %v1240_v25 }
0x1f57   :  { %1243 = vrot.lane.b32.xlu1 %v1241_v26, %s2101_s28 }
0x1fc9   :  { %v1244_v27 = vpop.permute.xlu1 %1243 }
0x1fca   :  { %1941 = vmatmul.mubr.msk.bf16.vlgmr.msra.gmra.mrb[28].mxu1 %vm191_vm3, %v1244_v27 }
0x1fcb   :  { %1953 = vmatpush3.bf16.msra.mxu1 %v2377_v18  ;;  %1956 = vmatprep.mubr.msk.bf16.mxu1 %vm2100_vm0, %v2099_v0 }
0x1fcc   :  { %1954 = vmatprep.subr.bf16.mxu1 %v2099_v0 }
0x1fcf   :  { %1955 = vmatpush3.bf16.msra.mxu1 %v2384_v63 }
0x1fd0   :  { %1968 = vmatprep.subr.bf16.mxu1 %v2099_v0 }
0x209d   :  { %v1282_v7 = vpop.f32.mrb[28].mxu1 }
0x209e   :  { %v1296_v28 = vadd.f32 %v1282_v7, %v2406_v31  ;;  %v1942_v29 = vpop.f32.mrb[29].mxu1  ;;  %v1289_v32 = vadd.f32 %v1288_v15, %v1282_v7 }
0x209f   :  { %v1285_v24 = vpop.f32.mrb[30].mxu1 }
0x20a0   :  { %1298 = vrot.lane.b32.xlu0 %v1296_v28, %s2101_s28  ;;  %v1943_v30 = vpop.f32.mrb[31].mxu1  ;;  %v1751_v33 = vmul.f32 -1.442695, %v1289_v32 }
0x20a2   :  { %2069 = vpow2.f32 %v1751_v33 }
0x20ac   :  { %v2070_v2 = vpop.eup %2069 }
0x20ad   :  { %v1293_v34 = vadd.f32 1.0, %v2070_v2 }
0x20af   :  { %2071 = vrcp.f32 %v1293_v34 }
0x20b9   :  { %v2072_v36 = vpop.eup %2071 }
0x2112   :  { %v1299_v39 = vpop.permute.xlu0 %1298 }
0x2113   :  { %v1301_v5 = vmul.f32 %v2072_v36, %v1299_v39 }
0x2115   :  { %1303 = vrot.lane.b32.xlu1 %v1301_v5, %s2101_s28  ;;  %v1522_v5 = vld [vmem:[#allocation2 + $0x30] sm:$0xff] }
0x2187   :  { %v1304_v40 = vpop.permute.xlu1 %1303 }
0x2188   :  { %v1306_v41 = vadd.f32 %v1304_v40, %v1288_v15 }
0x218a   :  { %2073 = vtanh.f32 %v1306_v41 }
0x2194   :  { %v2074_v42 = vpop.eup %2073 }
0x2195   :  { %v1308_v43 = vsub.f32 %v1240_v25, %v2074_v42 }
0x2197   :  { %1310 = vrot.lane.b32.xlu0 %v1308_v43, %s2103_s3 }
0x2209   :  { %v1311_v44 = vpop.permute.xlu0 %1310 }
0x220a   :  { %v1313_v45 = vmul.f32 %v2072_v36, %v1311_v44 }
0x220c   :  { %1315 = vrot.lane.b32.xlu1 %v1313_v45, %s2104_s29 }
0x227e   :  { %v1316_v46 = vpop.permute.xlu1 %1315 }
0x227f   :  { %v1318_v48 = vadd.f32 %v2074_v42, %v1316_v46 }
0x2281   :  { %v1319_v49 = vpack.c.bf16 %v1318_v48, %v1318_v48 }
0x2283   :  { %1321 = vrot.lane.b32.xlu0 %v1319_v49, %s2101_s28 }
0x22f5   :  { %v1322_v50 = vpop.permute.xlu0 %1321 }
0x22f6   :  { %1949 = vmatmul.mubr.msk.bf16.vlgmr.msra.gmra.mrb[32].mxu0 %vm191_vm3, %v1322_v50 }
0x22f7   :  { %1961 = vmatpush3.bf16.msra.mxu0 %v2377_v18  ;;  %1964 = vmatprep.mubr.msk.bf16.mxu0 %vm2100_vm0, %v2099_v0 }
0x22f8   :  { %1962 = vmatprep.subr.bf16.mxu0 %v2099_v0 }
0x22fb   :  { %1963 = vmatpush3.bf16.msra.mxu0 %v2384_v63 }
0x22fc   :  { %1976 = vmatprep.subr.bf16.mxu0 %v2099_v0 }
0x23c9   :  { %v1360_v51 = vpop.f32.mrb[32].mxu0 }
0x23ca   :  { %v1374_v52 = vadd.f32 %v1360_v51, %v2406_v31  ;;  %v1950_v47 = vpop.f32.mrb[33].mxu0  ;;  %v1367_v56 = vadd.f32 %v1366_v55, %v1360_v51 }
0x23cb   :  { %v1363_v53 = vpop.f32.mrb[34].mxu0 }
0x23cc   :  { %1376 = vrot.lane.b32.xlu1 %v1374_v52, %s2101_s28  ;;  %v1951_v54 = vpop.f32.mrb[35].mxu0  ;;  %v1753_v57 = vmul.f32 -1.442695, %v1367_v56 }
0x23ce   :  { %2075 = vpow2.f32 %v1753_v57 }
0x23d8   :  { %v2076_v58 = vpop.eup %2075 }
0x23d9   :  { %v1371_v60 = vadd.f32 1.0, %v2076_v58 }
0x23db   :  { %2077 = vrcp.f32 %v1371_v60 }
0x23e5   :  { %v2078_v61 = vpop.eup %2077 }
0x243e   :  { %v1377_v62 = vpop.permute.xlu1 %1376 }
0x243f   :  { %v1379_v1 = vmul.f32 %v2078_v61, %v1377_v62 }
0x2441   :  { %1381 = vrot.lane.b32.xlu0 %v1379_v1, %s2101_s28  ;;  %v1600_v1 = vld [vmem:[#allocation2 + $0x38] sm:$0xff] }
0x24b3   :  { %v1382_v3 = vpop.permute.xlu0 %1381 }
0x24b4   :  { %v1384_v4 = vadd.f32 %v1382_v3, %v1366_v55 }
0x24b6   :  { %2079 = vtanh.f32 %v1384_v4 }
0x24c0   :  { %v2080_v6 = vpop.eup %2079 }
0x24c1   :  { %v1386_v9 = vsub.f32 %v1318_v48, %v2080_v6 }
0x24c3   :  { %1388 = vrot.lane.b32.xlu1 %v1386_v9, %s2103_s3 }
0x2535   :  { %v1389_v10 = vpop.permute.xlu1 %1388 }
0x2536   :  { %v1391_v11 = vmul.f32 %v2078_v61, %v1389_v10 }
0x2538   :  { %1393 = vrot.lane.b32.xlu0 %v1391_v11, %s2104_s29 }
0x25aa   :  { %v1394_v12 = vpop.permute.xlu0 %1393 }
0x25ab   :  { %v1396_v14 = vadd.f32 %v2080_v6, %v1394_v12 }
0x25ad   :  { %v1397_v16 = vpack.c.bf16 %v1396_v14, %v1396_v14 }
0x25af   :  { %1399 = vrot.lane.b32.xlu1 %v1397_v16, %s2101_s28 }
0x2621   :  { %v1400_v8 = vpop.permute.xlu1 %1399 }
0x2622   :  { %1957 = vmatmul.mubr.msk.bf16.vlgmr.msra.gmra.mrb[32].mxu1 %vm191_vm3, %v1400_v8 }
0x2623   :  { %1969 = vmatpush3.bf16.msra.mxu1 %v2377_v18  ;;  %1972 = vmatprep.mubr.msk.bf16.mxu1 %vm2100_vm0, %v2099_v0 }
0x2624   :  { %1970 = vmatprep.subr.bf16.mxu1 %v2099_v0 }
0x2627   :  { %1971 = vmatpush3.bf16.msra.mxu1 %v2384_v63 }
0x26f5   :  { %v1438_v13 = vpop.f32.mrb[32].mxu1 }
0x26f6   :  { %v1452_v37 = vadd.f32 %v1438_v13, %v2406_v31  ;;  %v1958_v38 = vpop.f32.mrb[33].mxu1  ;;  %v1445_v59 = vadd.f32 %v1444_v19, %v1438_v13  ;;  %v2001_v13 = vld [vmem:[%s2559_s9] sm:$0xff]  }
0x26f7   :  { %v1441_v35 = vpop.f32.mrb[34].mxu1 }
0x26f8   :  { %1454 = vrot.lane.b32.xlu0 %v1452_v37, %s2101_s28  ;;  %v1959_v17 = vpop.f32.mrb[35].mxu1  ;;  %v1755_v20 = vmul.f32 -1.442695, %v1445_v59  ;;  %v2002_v37 = vld [vmem:[%s2559_s9 + $0x8] sm:$0xff]  }
0x26fa   :  { %2081 = vpow2.f32 %v1755_v20 }
0x2704   :  { %v2082_v18 = vpop.eup %2081 }
0x2705   :  { %v1449_v21 = vadd.f32 1.0, %v2082_v18  ;;  %v1760_v18 = vld [vmem:[%s2560_s10] ss:$0 sm:$0xff] }
0x2707   :  { %2083 = vrcp.f32 %v1449_v21 }
0x2711   :  { %v2084_v22 = vpop.eup %2083 }
0x276a   :  { %v1455_v23 = vpop.permute.xlu0 %1454 }
0x276b   :  { %v1457_v25 = vmul.f32 %v2084_v22, %v1455_v23 }
0x276d   :  { %1459 = vrot.lane.b32.xlu1 %v1457_v25, %s2101_s28 }
0x27df   :  { %v1460_v63 = vpop.permute.xlu1 %1459 }
0x27e0   :  { %v1462_v26 = vadd.f32 %v1460_v63, %v1444_v19 }
0x27e2   :  { %2085 = vtanh.f32 %v1462_v26 }
0x27ec   :  { %v2086_v27 = vpop.eup %2085 }
0x27ed   :  { %v1464_v7 = vsub.f32 %v1396_v14, %v2086_v27 }
0x27ef   :  { %1466 = vrot.lane.b32.xlu0 %v1464_v7, %s2103_s3 }
0x2861   :  { %v1467_v28 = vpop.permute.xlu0 %1466 }
0x2862   :  { %v1469_v29 = vmul.f32 %v2084_v22, %v1467_v28 }
0x2864   :  { %1471 = vrot.lane.b32.xlu1 %v1469_v29, %s2104_s29 }
0x28d6   :  { %v1472_v24 = vpop.permute.xlu1 %1471 }
0x28d7   :  { %v1474_v30 = vadd.f32 %v2086_v27, %v1472_v24 }
0x28d9   :  { %v1475_v15 = vpack.c.bf16 %v1474_v30, %v1474_v30 }
0x28db   :  { %1477 = vrot.lane.b32.xlu0 %v1475_v15, %s2101_s28 }
0x294d   :  { %v1478_v32 = vpop.permute.xlu0 %1477 }
0x294e   :  { %1965 = vmatmul.mubr.msk.bf16.vlgmr.msra.gmra.mrb[36].mxu0 %vm191_vm3, %v1478_v32 }
0x294f   :  { %1980 = vmatprep.mubr.msk.bf16.mxu0 %vm2100_vm0, %v2099_v0  ;;  %1977 = vmatpush3.bf16.msra.mxu0 %v2001_v13 }
0x2950   :  { %1978 = vmatprep.subr.bf16.mxu0 %v2099_v0 }
0x2953   :  { %1979 = vmatpush3.bf16.msra.mxu0 %v2002_v37 }
0x2a21   :  { %v1516_v33 = vpop.f32.mrb[36].mxu0 }
0x2a22   :  { %v1530_v2 = vadd.f32 %v1516_v33, %v2406_v31  ;;  %v1966_v34 = vpop.f32.mrb[37].mxu0  ;;  %v1523_v40 = vadd.f32 %v1522_v5, %v1516_v33 }
0x2a23   :  { %v1519_v36 = vpop.f32.mrb[38].mxu0 }
0x2a24   :  { %1532 = vrot.lane.b32.xlu1 %v1530_v2, %s2101_s28  ;;  %v1967_v39 = vpop.f32.mrb[39].mxu0  ;;  %v1757_v41 = vmul.f32 -1.442695, %v1523_v40 }
0x2a26   :  { %2087 = vpow2.f32 %v1757_v41 }
0x2a30   :  { %v2088_v42 = vpop.eup %2087 }
0x2a31   :  { %v1527_v43 = vadd.f32 1.0, %v2088_v42 }
0x2a33   :  { %2089 = vrcp.f32 %v1527_v43 }
0x2a3d   :  { %v2090_v44 = vpop.eup %2089 }
0x2a96   :  { %v1533_v45 = vpop.permute.xlu1 %1532 }
0x2a97   :  { %v1535_v46 = vmul.f32 %v2090_v44, %v1533_v45 }
0x2a99   :  { %1537 = vrot.lane.b32.xlu0 %v1535_v46, %s2101_s28 }
0x2b0b   :  { %v1538_v48 = vpop.permute.xlu0 %1537 }
0x2b0c   :  { %v1540_v49 = vadd.f32 %v1538_v48, %v1522_v5 }
0x2b0e   :  { %2091 = vtanh.f32 %v1540_v49 }
0x2b18   :  { %v2092_v50 = vpop.eup %2091 }
0x2b19   :  { %v1542_v51 = vsub.f32 %v1474_v30, %v2092_v50 }
0x2b1b   :  { %1544 = vrot.lane.b32.xlu1 %v1542_v51, %s2103_s3 }
0x2b8d   :  { %v1545_v52 = vpop.permute.xlu1 %1544 }
0x2b8e   :  { %v1547_v47 = vmul.f32 %v2090_v44, %v1545_v52 }
0x2b90   :  { %1549 = vrot.lane.b32.xlu0 %v1547_v47, %s2104_s29 }
0x2c02   :  { %v1550_v53 = vpop.permute.xlu0 %1549 }
0x2c03   :  { %v1552_v54 = vadd.f32 %v2092_v50, %v1550_v53 }
0x2c05   :  { %v1553_v55 = vpack.c.bf16 %v1552_v54, %v1552_v54 }
0x2c07   :  { %1555 = vrot.lane.b32.xlu1 %v1553_v55, %s2101_s28 }
0x2c79   :  { %v1556_v56 = vpop.permute.xlu1 %1555 }
0x2c7a   :  { %1973 = vmatmul.mubr.msk.bf16.vlgmr.msra.gmra.mrb[36].mxu1 %vm191_vm3, %v1556_v56 }
0x2d4d   :  { %v1594_v57 = vpop.f32.mrb[36].mxu1 }
0x2d4e   :  { %v1608_v58 = vadd.f32 %v1594_v57, %v2406_v31  ;;  %v1974_v60 = vpop.f32.mrb[37].mxu1  ;;  %v1601_v3 = vadd.f32 %v1600_v1, %v1594_v57 }
0x2d4f   :  { %v1597_v61 = vpop.f32.mrb[38].mxu1 }
0x2d50   :  { %1610 = vrot.lane.b32.xlu0 %v1608_v58, %s2101_s28  ;;  %v1975_v62 = vpop.f32.mrb[39].mxu1  ;;  %v1759_v4 = vmul.f32 -1.442695, %v1601_v3 }
0x2d52   :  { %2093 = vpow2.f32 %v1759_v4 }
0x2d5c   :  { %v2094_v6 = vpop.eup %2093 }
0x2d5d   :  { %v1605_v9 = vadd.f32 1.0, %v2094_v6 }
0x2d5f   :  { %2095 = vrcp.f32 %v1605_v9 }
0x2d69   :  { %v2096_v10 = vpop.eup %2095 }
0x2dc2   :  { %v1611_v11 = vpop.permute.xlu0 %1610 }
0x2dc3   :  { %v1613_v12 = vmul.f32 %v2096_v10, %v1611_v11 }
0x2dc5   :  { %1615 = vrot.lane.b32.xlu1 %v1613_v12, %s2101_s28 }
0x2e37   :  { %v1616_v14 = vpop.permute.xlu1 %1615 }
0x2e38   :  { %v1618_v16 = vadd.f32 %v1616_v14, %v1600_v1 }
0x2e3a   :  { %2097 = vtanh.f32 %v1618_v16 }
0x2e44   :  { %v2098_v31 = vpop.eup %2097 }
0x2e45   :  { %v1620_v8 = vsub.f32 %v1552_v54, %v2098_v31 }
0x2e47   :  { %1622 = vrot.lane.b32.xlu0 %v1620_v8, %s2103_s3 }
0x2eb9   :  { %v1623_v38 = vpop.permute.xlu0 %1622 }
0x2eba   :  { %v1625_v35 = vmul.f32 %v2096_v10, %v1623_v38 }
0x2ebc   :  { %1627 = vrot.lane.b32.xlu1 %v1625_v35, %s2104_s29 }
0x2f2e   :  { %v1628_v17 = vpop.permute.xlu1 %1627 }
0x2f2f   :  { %v1630_v19 = vadd.f32 %v2098_v31, %v1628_v17 }
0x2f31   :  { %v1631_v59 = vpack.c.bf16 %v1630_v19, %v1630_v19 }
0x2f33   :  { %1644 = vrot.lane.b32.xlu0 %v1631_v59, %s2101_s28 }
0x2fa5   :  { %v1645_v20 = vpop.permute.xlu0 %1644 }
0x2fa6   :  { %1981 = vmatmul.mubr.msk.bf16.vlgmr.msra.gmra.mrb[40].mxu0 %vm191_vm3, %v1645_v20 }
0x3079   :  { %v1695_v21 = vpop.f32.mrb[40].mxu0 }
0x307a   :  { %v1696_v0 = vadd.f32 %v1760_v18, %v1695_v21  ;;  %v1982_v22 = vpop.f32.mrb[41].mxu0 }
0x307b   :  { %v1698_v23 = vpop.f32.mrb[42].mxu0 }
0x307c   :  { %1702 = vst.msk [vmem:[%s2561_s11] sm:$0xff] %vm1701_vm4, %v1696_v0  ;;  %v1983_v25 = vpop.f32.mrb[43].mxu0 }

</bundles_post_ra>
